<compile_context>
chip_gen: v7x
topology: tpu7x:2x2x1
jax: 0.10.0
libtpu: 0.0.40
codegen_flags: <defaults>
</compile_context>

<pallas_src>
import functools
import math

import jax
import jax.numpy as jnp
from jax.experimental import pallas as pl
from jax.experimental.pallas import tpu as pltpu

_EPS = 1e-5  # PyTorch nn.LayerNorm default eps


# ----------------------------------------------------------------------------- helpers
def _layernorm(x, gamma, beta):
    mu = jnp.mean(x, axis=-1, keepdims=True)
    var = jnp.mean(jnp.square(x - mu), axis=-1, keepdims=True)
    return (x - mu) * jax.lax.rsqrt(var + _EPS) * gamma + beta


def _gelu_exact(x):
    # PyTorch nn.GELU() default (approximate='none'): 0.5*x*(1+erf(x/sqrt(2)))
    return 0.5 * x * (1.0 + jax.lax.erf(x * (1.0 / math.sqrt(2.0))))


# ----------------------------------------------------------------------------- kernel
def _model_kernel(x_ref, kmask_ref, tmask_ref,
                  g1_ref, be1_ref,
                  wqkv_ref, bqkv_ref, wo_ref, bo_ref,
                  g2_ref, be2_ref,
                  w1_ref, bm1_ref, w2_ref, bm2_ref,
                  ng_ref, nb_ref,
                  o_ref, *, num_layers, num_head, head_dim):
    S, D = x_ref.shape[1], x_ref.shape[2]
    H, Hd = num_head, head_dim
    HHd = H * Hd
    bf16 = jnp.bfloat16

    x0 = x_ref[0]                          # (S, D)  fp32 activation (resident)
    key_mask = kmask_ref[0]                # (1, S)  {0,1}
    tok_mask = tmask_ref[0]                # (S, 1)  {0,1}
    neg_bias = 1e6 * (1.0 - key_mask)      # (1, S)  broadcasts over the key axis
    scale = 1.0 / math.sqrt(Hd)

    # Shared-weight Block params: loaded once, reused by every layer.
    g1, be1 = g1_ref[...], be1_ref[...]
    wqkv, bqkv = wqkv_ref[...], bqkv_ref[...]    # (D, 3*H*Hd) bf16 / (1, 3*H*Hd) fp32
    wo, bo = wo_ref[...], bo_ref[...]            # (H*Hd, D)   bf16 / (1, D)       fp32
    g2, be2 = g2_ref[...], be2_ref[...]
    w1, bm1 = w1_ref[...], bm1_ref[...]          # (D, F) bf16 / (1, F) fp32
    w2, bm2 = w2_ref[...], bm2_ref[...]          # (F, D) bf16 / (1, D) fp32

    def encoder_block(x):
        # ---- attention sub-block (pre-LN) ------------------------------------
        h = _layernorm(x, g1, be1)                                     # (S, D) fp32
        # ONE fused QKV projection matmul (fp32 accumulation, bf16 operands).
        qkv = jnp.dot(h.astype(bf16), wqkv,
                      preferred_element_type=jnp.float32) + bqkv        # (S, 3*H*Hd)
        qkv16 = qkv.astype(bf16)

        attn = jnp.zeros((S, D), jnp.float32)
        for hi in range(H):   # static unroll; all operands stay 2D (no relayouts)
            qh = qkv16[:, hi * Hd:(hi + 1) * Hd]                        # (S, Hd)
            kh = qkv16[:, HHd + hi * Hd:HHd + (hi + 1) * Hd]            # (S, Hd)
            vh = qkv16[:, 2 * HHd + hi * Hd:2 * HHd + (hi + 1) * Hd]    # (S, Hd)
            s = jnp.einsum('qd,kd->qk', qh, kh,
                           preferred_element_type=jnp.float32) * scale  # (S, S)
            s = s - neg_bias                                            # mask keys
            s = s - jnp.max(s, axis=-1, keepdims=True)
            p = jnp.exp(s)
            p = p * pl.reciprocal(jnp.sum(p, axis=-1, keepdims=True), approx=True)
            o = jnp.dot(p.astype(bf16), vh,
                        preferred_element_type=jnp.float32)             # (S, Hd)
            # Output projection folded per head (row slice of W_o), accumulated
            # in fp32 — no (H, S, D) intermediate, no head concat.
            attn = attn + jnp.dot(o.astype(bf16), wo[hi * Hd:(hi + 1) * Hd, :],
                                  preferred_element_type=jnp.float32)
        x = x + attn + bo                      # residual (dropout == identity)

        # ---- MLP sub-block (pre-LN) ------------------------------------------
        h2 = _layernorm(x, g2, be2)
        ff = jnp.dot(h2.astype(bf16), w1,
                     preferred_element_type=jnp.float32) + bm1
        ff = _gelu_exact(ff)
        y = jnp.dot(ff.astype(bf16), w2,
                    preferred_element_type=jnp.float32) + bm2
        return x + y

    # shared_weight=True: same Block applied num_layers times.
    x = jax.lax.fori_loop(0, num_layers, lambda _, xc: encoder_block(xc), x0)

    # final LayerNorm * token mask, fused into the same kernel.
    o_ref[0] = _layernorm(x, ng_ref[...], nb_ref[...]) * tok_mask


# ----------------------------------------------------------------------------- wrapper
def _const_spec(a):
    return pl.BlockSpec(a.shape, lambda b, n=a.ndim: (0,) * n)


def prepare_kernel_params(params, cfg):
    """One-time weight preprocessing (bf16 cast + QKV fusion). Do NOT call per forward."""
    p = params['block']
    bf16 = jnp.bfloat16
    wqkv = jnp.concatenate([p['wq'], p['wk'], p['wv']], axis=1).astype(bf16)  # (D, 3*H*Hd)
    bqkv = jnp.concatenate([p['bq'], p['bk'], p['bv']], axis=1)               # (1, 3*H*Hd) fp32
    return (
        p['g1'], p['be1'],
        wqkv, bqkv,
        p['wo'].astype(bf16), p['bo'],        # (H*Hd, D) bf16 / (1, D) fp32
        p['g2'], p['be2'],
        p['w1'].astype(bf16), p['bm1'],
        p['w2'].astype(bf16), p['bm2'],
        params['norm_g'], params['norm_b'],
    )


def run_model(X, key_mask, tok_mask, kparams, cfg):
    B, S, D = X.shape

    in_specs = ([pl.BlockSpec((1, S, D), lambda b: (b, 0, 0)),
                 pl.BlockSpec((1, 1, S), lambda b: (b, 0, 0)),
                 pl.BlockSpec((1, S, 1), lambda b: (b, 0, 0))]
                + [_const_spec(a) for a in kparams])

    kernel = functools.partial(_model_kernel,
                               num_layers=cfg['num_layers'],
                               num_head=cfg['num_head'],
                               head_dim=cfg['head_dim'])

    return pl.pallas_call(
        kernel,
        out_shape=jax.ShapeDtypeStruct((B, S, D), jnp.float32),
        grid_spec=pltpu.PrefetchScalarGridSpec(
            num_scalar_prefetch=0,
            grid=(B,),                       # >=2 parallel steps -> both v7x TCs busy
            in_specs=in_specs,
            out_specs=pl.BlockSpec((1, S, D), lambda b: (b, 0, 0))),
        compiler_params=pltpu.CompilerParams(
            dimension_semantics=("parallel",),
            vmem_limit_bytes=64 * 1024 * 1024),
    )(X, key_mask, tok_mask, *kparams)


def model_forward(input_ids, mask, word_emb, pos_emb, kparams, cfg):
    B, S = input_ids.shape
    # Embeddings (gather glue in plain JAX).
    X = word_emb[input_ids] + pos_emb[jnp.arange(S)][None, :, :]
    key_mask = mask.astype(jnp.float32).reshape(B, 1, S)
    tok_mask = mask.astype(jnp.float32).reshape(B, S, 1)
    return run_model(X, key_mask, tok_mask, kparams, cfg)


# ----------------------------------------------------------------------------- params
def init_params(key, cfg):
    D, H, Hd = cfg['dim'], cfg['num_head'], cfg['head_dim']
    HD, Hdim = H * Hd, cfg['hidden_dim']
    keys = iter(jax.random.split(key, 32))

    def lin(fan_in, fan_out):
        bound = 1.0 / math.sqrt(fan_in)
        w = jax.random.uniform(next(keys), (fan_in, fan_out), jnp.float32, -bound, bound)
        b = jax.random.uniform(next(keys), (1, fan_out), jnp.float32, -bound, bound)
        return w, b

    wq, bq = lin(D, HD)
    wk, bk = lin(D, HD)
    wv, bv = lin(D, HD)
    wo, bo = lin(HD, D)
    w1, bm1 = lin(D, Hdim)
    w2, bm2 = lin(Hdim, D)
    block = dict(
        g1=jnp.ones((1, D), jnp.float32), be1=jnp.zeros((1, D), jnp.float32),
        wq=wq, bq=bq, wk=wk, bk=bk, wv=wv, bv=bv, wo=wo, bo=bo,
        g2=jnp.ones((1, D), jnp.float32), be2=jnp.zeros((1, D), jnp.float32),
        w1=w1, bm1=bm1, w2=w2, bm2=bm2)
    return dict(
        word_emb=0.02 * jax.random.normal(next(keys), (cfg['vocab_size'], D), jnp.float32),
        pos_emb=0.02 * jax.random.normal(next(keys), (cfg['max_seq_len'], D), jnp.float32),
        block=block,
        norm_g=jnp.ones((1, D), jnp.float32),
        norm_b=jnp.zeros((1, D), jnp.float32))


# ----------------------------------------------------------------------------- references
def reference_forward(input_ids, mask, params, cfg, *, emulate_bf16):
    """Plain-JAX reference.

    emulate_bf16=True : mirrors the kernel's numerics (bf16 MXU operands,
                        fp32 accumulation; exact softmax divide).
    emulate_bf16=False: exact fp32 / HIGHEST precision (PyTorch semantics).
    """
    B, S = input_ids.shape
    D, H, Hd = cfg['dim'], cfg['num_head'], cfg['head_dim']
    p = params['block']
    m = mask.astype(jnp.float32)

    cast = (lambda a: a.astype(jnp.bfloat16)) if emulate_bf16 else (lambda a: a)
    kw = dict(preferred_element_type=jnp.float32,
              precision=None if emulate_bf16 else jax.lax.Precision.HIGHEST)

    X = params['word_emb'][input_ids] + params['pos_emb'][jnp.arange(S)][None]
    for _ in range(cfg['num_layers']):
        h = _layernorm(X, p['g1'], p['be1'])
        q = (jnp.einsum('bsd,df->bsf', cast(h), cast(p['wq']), **kw) + p['bq'])
        k = (jnp.einsum('bsd,df->bsf', cast(h), cast(p['wk']), **kw) + p['bk'])
        v = (jnp.einsum('bsd,df->bsf', cast(h), cast(p['wv']), **kw) + p['bv'])
        q = q.reshape(B, S, H, Hd).transpose(0, 2, 1, 3)
        k = k.reshape(B, S, H, Hd).transpose(0, 2, 1, 3)
        v = v.reshape(B, S, H, Hd).transpose(0, 2, 1, 3)
        dot = jnp.einsum('bhqd,bhkd->bhqk', cast(q), cast(k), **kw) / math.sqrt(Hd)
        dot = dot - 1e6 * (1.0 - m)[:, None, None, :]
        attn = jax.nn.softmax(dot, axis=-1)
        out = jnp.einsum('bhqk,bhkd->bhqd', cast(attn), cast(v), **kw)
        out = out.transpose(0, 2, 1, 3).reshape(B, S, H * Hd)
        X = X + jnp.einsum('bsk,kd->bsd', cast(out), cast(p['wo']), **kw) + p['bo']
        h2 = _layernorm(X, p['g2'], p['be2'])
        ff = _gelu_exact(jnp.einsum('bsd,df->bsf', cast(h2), cast(p['w1']), **kw) + p['bm1'])
        X = X + jnp.einsum('bsf,fd->bsd', cast(ff), cast(p['w2']), **kw) + p['bm2']
    return _layernorm(X, params['norm_g'], params['norm_b']) * m[:, :, None]


# ----------------------------------------------------------------------------- main
if __name__ == "__main__":
    cfg = dict(vocab_size=64, max_seq_len=16, dim=32, embedding_dim=32,
               hidden_dim=64, num_head=2, head_dim=16,
               num_layers=2, shared_weight=True, dropout_prob=0.0)

    key = jax.random.PRNGKey(0)
    k_param, k_ids = jax.random.split(key)
    params = init_params(k_param, cfg)
    # Kernel-ready weights built ONCE (bf16 + fused QKV), outside the call path.
    kparams = jax.tree_util.tree_map(jax.block_until_ready,
                                     prepare_kernel_params(params, cfg))

    B, S = 2, 16
    input_ids = jax.random.randint(k_ids, (B, S), 0, cfg['vocab_size'], dtype=jnp.int32)
    # ones mask with some padding on the second example to exercise masking
    mask = jnp.ones((B, S), jnp.int32).at[1, -4:].set(0)

    fwd = jax.jit(lambda ids, msk, we, pe, kp: model_forward(ids, msk, we, pe, kp, cfg))
    out = jax.block_until_ready(
        fwd(input_ids, mask, params['word_emb'], params['pos_emb'], kparams))

    ref_bf16 = jax.block_until_ready(
        reference_forward(input_ids, mask, params, cfg, emulate_bf16=True))
    ref_fp32 = jax.block_until_ready(
        reference_forward(input_ids, mask, params, cfg, emulate_bf16=False))

    assert out.shape == (B, S, cfg['dim']) and out.dtype == jnp.float32
    err_bf16 = float(jnp.max(jnp.abs(out - ref_bf16)))
    err_fp32 = float(jnp.max(jnp.abs(out - ref_fp32)))
    # Primary check: reference with identical bf16-MXU numerics (only diffs are
    # the approximate EUP reciprocal and accumulation order).
    assert jnp.allclose(out, ref_bf16, atol=2e-2, rtol=2e-2), \
        f"bf16-mirror ref max abs err {err_bf16}"
    # Sanity check vs exact fp32 (PyTorch-faithful) reference; looser tolerance
    # reflects the intentional bf16-MXU numerics, amplified through LayerNorms.
    assert jnp.allclose(out, ref_fp32, atol=5e-2, rtol=5e-2), \
        f"fp32 ref max abs err {err_fp32}"

    print("KERNEL_OK")
</pallas_src>

<mosaic_0001>
module attributes {stable_mosaic.version = 11 : i64} {
  func.func @_model_kernel(%arg0: i32, %arg1: memref<1x16x32xf32, #tpu.memory_space<vmem>>, %arg2: memref<1x1x16xf32, #tpu.memory_space<vmem>>, %arg3: memref<1x16x1xf32, #tpu.memory_space<vmem>>, %arg4: memref<1x32xf32, #tpu.memory_space<vmem>>, %arg5: memref<1x32xf32, #tpu.memory_space<vmem>>, %arg6: memref<32x96xbf16, #tpu.memory_space<vmem>>, %arg7: memref<1x96xf32, #tpu.memory_space<vmem>>, %arg8: memref<32x32xbf16, #tpu.memory_space<vmem>>, %arg9: memref<1x32xf32, #tpu.memory_space<vmem>>, %arg10: memref<1x32xf32, #tpu.memory_space<vmem>>, %arg11: memref<1x32xf32, #tpu.memory_space<vmem>>, %arg12: memref<32x64xbf16, #tpu.memory_space<vmem>>, %arg13: memref<1x64xf32, #tpu.memory_space<vmem>>, %arg14: memref<64x32xbf16, #tpu.memory_space<vmem>>, %arg15: memref<1x32xf32, #tpu.memory_space<vmem>>, %arg16: memref<1x32xf32, #tpu.memory_space<vmem>>, %arg17: memref<1x32xf32, #tpu.memory_space<vmem>>, %arg18: memref<1x16x32xf32, #tpu.memory_space<vmem>>) attributes {dimension_semantics = [#tpu.dimension_semantics<parallel>], iteration_bounds = array<i64: 2>, scalar_prefetch = 0 : i64, scratch_operands = 0 : i64, tpu.core_type = #tpu.core_type<tc>, window_params = [{transform_indices = @transform_0, window_bounds = array<i64: 1, 16, 32>}, {transform_indices = @transform_1, window_bounds = array<i64: 1, 1, 16>}, {transform_indices = @transform_2, window_bounds = array<i64: 1, 16, 1>}, {pipeline_mode = #tpu.pipeline_mode<synchronous>, transform_indices = @transform_3, window_bounds = array<i64: 1, 32>}, {pipeline_mode = #tpu.pipeline_mode<synchronous>, transform_indices = @transform_4, window_bounds = array<i64: 1, 32>}, {pipeline_mode = #tpu.pipeline_mode<synchronous>, transform_indices = @transform_5, window_bounds = array<i64: 32, 96>}, {pipeline_mode = #tpu.pipeline_mode<synchronous>, transform_indices = @transform_6, window_bounds = array<i64: 1, 96>}, {pipeline_mode = #tpu.pipeline_mode<synchronous>, transform_indices = @transform_7, window_bounds = array<i64: 32, 32>}, {pipeline_mode = #tpu.pipeline_mode<synchronous>, transform_indices = @transform_8, window_bounds = array<i64: 1, 32>}, {pipeline_mode = #tpu.pipeline_mode<synchronous>, transform_indices = @transform_9, window_bounds = array<i64: 1, 32>}, {pipeline_mode = #tpu.pipeline_mode<synchronous>, transform_indices = @transform_10, window_bounds = array<i64: 1, 32>}, {pipeline_mode = #tpu.pipeline_mode<synchronous>, transform_indices = @transform_11, window_bounds = array<i64: 32, 64>}, {pipeline_mode = #tpu.pipeline_mode<synchronous>, transform_indices = @transform_12, window_bounds = array<i64: 1, 64>}, {pipeline_mode = #tpu.pipeline_mode<synchronous>, transform_indices = @transform_13, window_bounds = array<i64: 64, 32>}, {pipeline_mode = #tpu.pipeline_mode<synchronous>, transform_indices = @transform_14, window_bounds = array<i64: 1, 32>}, {pipeline_mode = #tpu.pipeline_mode<synchronous>, transform_indices = @transform_15, window_bounds = array<i64: 1, 32>}, {pipeline_mode = #tpu.pipeline_mode<synchronous>, transform_indices = @transform_16, window_bounds = array<i64: 1, 32>}, {transform_indices = @transform_17, window_bounds = array<i64: 1, 16, 32>}]} {
    %c0 = arith.constant 0 : index
    %c0_0 = arith.constant 0 : index
    %c0_1 = arith.constant 0 : index
    %0 = vector.load %arg1[%c0, %c0_0, %c0_1] : memref<1x16x32xf32, #tpu.memory_space<vmem>>, vector<1x16x32xf32>
    %1 = vector.shape_cast %0 : vector<1x16x32xf32> to vector<16x32xf32>
    %c0_2 = arith.constant 0 : index
    %c0_3 = arith.constant 0 : index
    %c0_4 = arith.constant 0 : index
    %2 = vector.load %arg2[%c0_2, %c0_3, %c0_4] : memref<1x1x16xf32, #tpu.memory_space<vmem>>, vector<1x1x16xf32>
    %3 = vector.shape_cast %2 : vector<1x1x16xf32> to vector<1x16xf32>
    %c0_5 = arith.constant 0 : index
    %c0_6 = arith.constant 0 : index
    %c0_7 = arith.constant 0 : index
    %4 = vector.load %arg3[%c0_5, %c0_6, %c0_7] : memref<1x16x1xf32, #tpu.memory_space<vmem>>, vector<1x16x1xf32>
    %5 = vector.shape_cast %4 : vector<1x16x1xf32> to vector<16x1xf32>
    %cst = arith.constant 1.000000e+00 : f32
    %6 = vector.broadcast %cst : f32 to vector<1x16xf32>
    %7 = arith.subf %6, %3 : vector<1x16xf32>
    %cst_8 = arith.constant 1.000000e+06 : f32
    %8 = vector.broadcast %cst_8 : f32 to vector<1x16xf32>
    %9 = arith.mulf %8, %7 : vector<1x16xf32>
    %c0_9 = arith.constant 0 : index
    %c0_10 = arith.constant 0 : index
    %10 = vector.load %arg4[%c0_9, %c0_10] : memref<1x32xf32, #tpu.memory_space<vmem>>, vector<1x32xf32>
    %c0_11 = arith.constant 0 : index
    %c0_12 = arith.constant 0 : index
    %11 = vector.load %arg5[%c0_11, %c0_12] : memref<1x32xf32, #tpu.memory_space<vmem>>, vector<1x32xf32>
    %c0_13 = arith.constant 0 : index
    %c0_14 = arith.constant 0 : index
    %12 = vector.load %arg6[%c0_13, %c0_14] : memref<32x96xbf16, #tpu.memory_space<vmem>>, vector<32x96xbf16>
    %c0_15 = arith.constant 0 : index
    %c0_16 = arith.constant 0 : index
    %13 = vector.load %arg7[%c0_15, %c0_16] : memref<1x96xf32, #tpu.memory_space<vmem>>, vector<1x96xf32>
    %c0_17 = arith.constant 0 : index
    %c0_18 = arith.constant 0 : index
    %14 = vector.load %arg8[%c0_17, %c0_18] : memref<32x32xbf16, #tpu.memory_space<vmem>>, vector<32x32xbf16>
    %c0_19 = arith.constant 0 : index
    %c0_20 = arith.constant 0 : index
    %15 = vector.load %arg9[%c0_19, %c0_20] : memref<1x32xf32, #tpu.memory_space<vmem>>, vector<1x32xf32>
    %c0_21 = arith.constant 0 : index
    %c0_22 = arith.constant 0 : index
    %16 = vector.load %arg10[%c0_21, %c0_22] : memref<1x32xf32, #tpu.memory_space<vmem>>, vector<1x32xf32>
    %c0_23 = arith.constant 0 : index
    %c0_24 = arith.constant 0 : index
    %17 = vector.load %arg11[%c0_23, %c0_24] : memref<1x32xf32, #tpu.memory_space<vmem>>, vector<1x32xf32>
    %c0_25 = arith.constant 0 : index
    %c0_26 = arith.constant 0 : index
    %18 = vector.load %arg12[%c0_25, %c0_26] : memref<32x64xbf16, #tpu.memory_space<vmem>>, vector<32x64xbf16>
    %c0_27 = arith.constant 0 : index
    %c0_28 = arith.constant 0 : index
    %19 = vector.load %arg13[%c0_27, %c0_28] : memref<1x64xf32, #tpu.memory_space<vmem>>, vector<1x64xf32>
    %c0_29 = arith.constant 0 : index
    %c0_30 = arith.constant 0 : index
    %20 = vector.load %arg14[%c0_29, %c0_30] : memref<64x32xbf16, #tpu.memory_space<vmem>>, vector<64x32xbf16>
    %c0_31 = arith.constant 0 : index
    %c0_32 = arith.constant 0 : index
    %21 = vector.load %arg15[%c0_31, %c0_32] : memref<1x32xf32, #tpu.memory_space<vmem>>, vector<1x32xf32>
    %c0_i32 = arith.constant 0 : i32
    %c2_i32 = arith.constant 2 : i32
    %22 = arith.addi %c0_i32, %c2_i32 : i32
    %c1_i32 = arith.constant 1 : i32
    %23 = scf.for %arg19 = %c0_i32 to %22 step %c1_i32 iter_args(%arg20 = %1) -> (vector<16x32xf32>)  : i32 {
      %cst_45 = arith.constant dense<0.000000e+00> : vector<16xf32>
      %53 = vector.multi_reduction <add>, %arg20, %cst_45 [1] : vector<16x32xf32> to vector<16xf32>
      %54 = vector.shape_cast %53 : vector<16xf32> to vector<16x1xf32>
      %cst_46 = arith.constant 3.200000e+01 : f32
      %55 = vector.broadcast %cst_46 : f32 to vector<16x1xf32>
      %56 = arith.divf %54, %55 : vector<16x1xf32>
      %57 = vector.broadcast %56 : vector<16x1xf32> to vector<16x32xf32>
      %58 = arith.subf %arg20, %57 : vector<16x32xf32>
      %59 = arith.mulf %58, %58 : vector<16x32xf32>
      %cst_47 = arith.constant dense<0.000000e+00> : vector<16xf32>
      %60 = vector.multi_reduction <add>, %59, %cst_47 [1] : vector<16x32xf32> to vector<16xf32>
      %61 = vector.shape_cast %60 : vector<16xf32> to vector<16x1xf32>
      %cst_48 = arith.constant 3.200000e+01 : f32
      %62 = vector.broadcast %cst_48 : f32 to vector<16x1xf32>
      %63 = arith.divf %61, %62 : vector<16x1xf32>
      %64 = vector.broadcast %56 : vector<16x1xf32> to vector<16x32xf32>
      %65 = arith.subf %arg20, %64 : vector<16x32xf32>
      %cst_49 = arith.constant 9.99999974E-6 : f32
      %66 = vector.broadcast %cst_49 : f32 to vector<16x1xf32>
      %67 = arith.addf %63, %66 : vector<16x1xf32>
      %68 = math.rsqrt %67 : vector<16x1xf32>
      %69 = vector.broadcast %68 : vector<16x1xf32> to vector<16x32xf32>
      %70 = arith.mulf %65, %69 : vector<16x32xf32>
      %71 = vector.broadcast %10 : vector<1x32xf32> to vector<16x32xf32>
      %72 = arith.mulf %70, %71 : vector<16x32xf32>
      %73 = vector.broadcast %11 : vector<1x32xf32> to vector<16x32xf32>
      %74 = arith.addf %72, %73 : vector<16x32xf32>
      %75 = arith.truncf %74 : vector<16x32xf32> to vector<16x32xbf16>
      %cst_50 = arith.constant dense<0.000000e+00> : vector<16x96xf32>
      %76 = tpu.matmul %75, %12, %cst_50 {dimension_numbers = #tpu.dot_dimension_numbers<[1], [0], [0], [1], [0, 0, 1, 1], [], []>} : vector<16x32xbf16>, vector<32x96xbf16>, vector<16x96xf32> -> vector<16x96xf32>
      %77 = vector.broadcast %13 : vector<1x96xf32> to vector<16x96xf32>
      %78 = arith.addf %76, %77 : vector<16x96xf32>
      %79 = arith.truncf %78 : vector<16x96xf32> to vector<16x96xbf16>
      %cst_51 = arith.constant 0.000000e+00 : f32
      %80 = vector.broadcast %cst_51 : f32 to vector<16x32xf32>
      %81 = vector.extract_strided_slice %79 {offsets = [0, 0], sizes = [16, 16], strides = [1, 1]} : vector<16x96xbf16> to vector<16x16xbf16>
      %82 = vector.extract_strided_slice %79 {offsets = [0, 32], sizes = [16, 16], strides = [1, 1]} : vector<16x96xbf16> to vector<16x16xbf16>
      %83 = vector.extract_strided_slice %79 {offsets = [0, 64], sizes = [16, 16], strides = [1, 1]} : vector<16x96xbf16> to vector<16x16xbf16>
      "tpu.trace_start"() <{level = 10 : i32, message = "qd,kd->qk"}> : () -> ()
      %cst_52 = arith.constant dense<0.000000e+00> : vector<16x16xf32>
      %84 = tpu.matmul %81, %82, %cst_52 {dimension_numbers = #tpu.dot_dimension_numbers<[1], [1], [0], [0], [0, 0, 1, 0], [], []>} : vector<16x16xbf16>, vector<16x16xbf16>, vector<16x16xf32> -> vector<16x16xf32>
      "tpu.trace_stop"() : () -> ()
      %cst_53 = arith.constant 2.500000e-01 : f32
      %85 = vector.broadcast %cst_53 : f32 to vector<16x16xf32>
      %86 = arith.mulf %84, %85 : vector<16x16xf32>
      %87 = vector.broadcast %9 : vector<1x16xf32> to vector<16x16xf32>
      %88 = arith.subf %86, %87 : vector<16x16xf32>
      %cst_54 = arith.constant dense<0xFF800000> : vector<16xf32>
      %89 = vector.multi_reduction <maximumf>, %88, %cst_54 [1] : vector<16x16xf32> to vector<16xf32>
      %90 = vector.shape_cast %89 : vector<16xf32> to vector<16x1xf32>
      %91 = vector.broadcast %90 : vector<16x1xf32> to vector<16x16xf32>
      %92 = arith.subf %88, %91 : vector<16x16xf32>
      %93 = math.exp %92 : vector<16x16xf32>
      %cst_55 = arith.constant dense<0.000000e+00> : vector<16xf32>
      %94 = vector.multi_reduction <add>, %93, %cst_55 [1] : vector<16x16xf32> to vector<16xf32>
      %95 = vector.shape_cast %94 : vector<16xf32> to vector<16x1xf32>
      %96 = tpu.reciprocal %95 {approx = true} : vector<16x1xf32> -> vector<16x1xf32>
      %97 = vector.broadcast %96 : vector<16x1xf32> to vector<16x16xf32>
      %98 = arith.mulf %93, %97 : vector<16x16xf32>
      %99 = arith.truncf %98 : vector<16x16xf32> to vector<16x16xbf16>
      %cst_56 = arith.constant dense<0.000000e+00> : vector<16x16xf32>
      %100 = tpu.matmul %99, %83, %cst_56 {dimension_numbers = #tpu.dot_dimension_numbers<[1], [0], [0], [1], [0, 0, 1, 1], [], []>} : vector<16x16xbf16>, vector<16x16xbf16>, vector<16x16xf32> -> vector<16x16xf32>
      %101 = arith.truncf %100 : vector<16x16xf32> to vector<16x16xbf16>
      %102 = vector.extract_strided_slice %14 {offsets = [0, 0], sizes = [16, 32], strides = [1, 1]} : vector<32x32xbf16> to vector<16x32xbf16>
      %cst_57 = arith.constant dense<0.000000e+00> : vector<16x32xf32>
      %103 = tpu.matmul %101, %102, %cst_57 {dimension_numbers = #tpu.dot_dimension_numbers<[1], [0], [0], [1], [0, 0, 1, 1], [], []>} : vector<16x16xbf16>, vector<16x32xbf16>, vector<16x32xf32> -> vector<16x32xf32>
      %104 = arith.addf %80, %103 : vector<16x32xf32>
      %105 = vector.extract_strided_slice %79 {offsets = [0, 16], sizes = [16, 16], strides = [1, 1]} : vector<16x96xbf16> to vector<16x16xbf16>
      %106 = vector.extract_strided_slice %79 {offsets = [0, 48], sizes = [16, 16], strides = [1, 1]} : vector<16x96xbf16> to vector<16x16xbf16>
      %107 = vector.extract_strided_slice %79 {offsets = [0, 80], sizes = [16, 16], strides = [1, 1]} : vector<16x96xbf16> to vector<16x16xbf16>
      "tpu.trace_start"() <{level = 10 : i32, message = "qd,kd->qk"}> : () -> ()
      %cst_58 = arith.constant dense<0.000000e+00> : vector<16x16xf32>
      %108 = tpu.matmul %105, %106, %cst_58 {dimension_numbers = #tpu.dot_dimension_numbers<[1], [1], [0], [0], [0, 0, 1, 0], [], []>} : vector<16x16xbf16>, vector<16x16xbf16>, vector<16x16xf32> -> vector<16x16xf32>
      "tpu.trace_stop"() : () -> ()
      %cst_59 = arith.constant 2.500000e-01 : f32
      %109 = vector.broadcast %cst_59 : f32 to vector<16x16xf32>
      %110 = arith.mulf %108, %109 : vector<16x16xf32>
      %111 = vector.broadcast %9 : vector<1x16xf32> to vector<16x16xf32>
      %112 = arith.subf %110, %111 : vector<16x16xf32>
      %cst_60 = arith.constant dense<0xFF800000> : vector<16xf32>
      %113 = vector.multi_reduction <maximumf>, %112, %cst_60 [1] : vector<16x16xf32> to vector<16xf32>
      %114 = vector.shape_cast %113 : vector<16xf32> to vector<16x1xf32>
      %115 = vector.broadcast %114 : vector<16x1xf32> to vector<16x16xf32>
      %116 = arith.subf %112, %115 : vector<16x16xf32>
      %117 = math.exp %116 : vector<16x16xf32>
      %cst_61 = arith.constant dense<0.000000e+00> : vector<16xf32>
      %118 = vector.multi_reduction <add>, %117, %cst_61 [1] : vector<16x16xf32> to vector<16xf32>
      %119 = vector.shape_cast %118 : vector<16xf32> to vector<16x1xf32>
      %120 = tpu.reciprocal %119 {approx = true} : vector<16x1xf32> -> vector<16x1xf32>
      %121 = vector.broadcast %120 : vector<16x1xf32> to vector<16x16xf32>
      %122 = arith.mulf %117, %121 : vector<16x16xf32>
      %123 = arith.truncf %122 : vector<16x16xf32> to vector<16x16xbf16>
      %cst_62 = arith.constant dense<0.000000e+00> : vector<16x16xf32>
      %124 = tpu.matmul %123, %107, %cst_62 {dimension_numbers = #tpu.dot_dimension_numbers<[1], [0], [0], [1], [0, 0, 1, 1], [], []>} : vector<16x16xbf16>, vector<16x16xbf16>, vector<16x16xf32> -> vector<16x16xf32>
      %125 = arith.truncf %124 : vector<16x16xf32> to vector<16x16xbf16>
      %126 = vector.extract_strided_slice %14 {offsets = [16, 0], sizes = [16, 32], strides = [1, 1]} : vector<32x32xbf16> to vector<16x32xbf16>
      %cst_63 = arith.constant dense<0.000000e+00> : vector<16x32xf32>
      %127 = tpu.matmul %125, %126, %cst_63 {dimension_numbers = #tpu.dot_dimension_numbers<[1], [0], [0], [1], [0, 0, 1, 1], [], []>} : vector<16x16xbf16>, vector<16x32xbf16>, vector<16x32xf32> -> vector<16x32xf32>
      %128 = arith.addf %104, %127 : vector<16x32xf32>
      %129 = arith.addf %arg20, %128 : vector<16x32xf32>
      %130 = vector.broadcast %15 : vector<1x32xf32> to vector<16x32xf32>
      %131 = arith.addf %129, %130 : vector<16x32xf32>
      %cst_64 = arith.constant dense<0.000000e+00> : vector<16xf32>
      %132 = vector.multi_reduction <add>, %131, %cst_64 [1] : vector<16x32xf32> to vector<16xf32>
      %133 = vector.shape_cast %132 : vector<16xf32> to vector<16x1xf32>
      %cst_65 = arith.constant 3.200000e+01 : f32
      %134 = vector.broadcast %cst_65 : f32 to vector<16x1xf32>
      %135 = arith.divf %133, %134 : vector<16x1xf32>
      %136 = vector.broadcast %135 : vector<16x1xf32> to vector<16x32xf32>
      %137 = arith.subf %131, %136 : vector<16x32xf32>
      %138 = arith.mulf %137, %137 : vector<16x32xf32>
      %cst_66 = arith.constant dense<0.000000e+00> : vector<16xf32>
      %139 = vector.multi_reduction <add>, %138, %cst_66 [1] : vector<16x32xf32> to vector<16xf32>
      %140 = vector.shape_cast %139 : vector<16xf32> to vector<16x1xf32>
      %cst_67 = arith.constant 3.200000e+01 : f32
      %141 = vector.broadcast %cst_67 : f32 to vector<16x1xf32>
      %142 = arith.divf %140, %141 : vector<16x1xf32>
      %143 = vector.broadcast %135 : vector<16x1xf32> to vector<16x32xf32>
      %144 = arith.subf %131, %143 : vector<16x32xf32>
      %cst_68 = arith.constant 9.99999974E-6 : f32
      %145 = vector.broadcast %cst_68 : f32 to vector<16x1xf32>
      %146 = arith.addf %142, %145 : vector<16x1xf32>
      %147 = math.rsqrt %146 : vector<16x1xf32>
      %148 = vector.broadcast %147 : vector<16x1xf32> to vector<16x32xf32>
      %149 = arith.mulf %144, %148 : vector<16x32xf32>
      %150 = vector.broadcast %16 : vector<1x32xf32> to vector<16x32xf32>
      %151 = arith.mulf %149, %150 : vector<16x32xf32>
      %152 = vector.broadcast %17 : vector<1x32xf32> to vector<16x32xf32>
      %153 = arith.addf %151, %152 : vector<16x32xf32>
      %154 = arith.truncf %153 : vector<16x32xf32> to vector<16x32xbf16>
      %cst_69 = arith.constant dense<0.000000e+00> : vector<16x64xf32>
      %155 = tpu.matmul %154, %18, %cst_69 {dimension_numbers = #tpu.dot_dimension_numbers<[1], [0], [0], [1], [0, 0, 1, 1], [], []>} : vector<16x32xbf16>, vector<32x64xbf16>, vector<16x64xf32> -> vector<16x64xf32>
      %156 = vector.broadcast %19 : vector<1x64xf32> to vector<16x64xf32>
      %157 = arith.addf %155, %156 : vector<16x64xf32>
      %cst_70 = arith.constant 5.000000e-01 : f32
      %158 = vector.broadcast %cst_70 : f32 to vector<16x64xf32>
      %159 = arith.mulf %158, %157 : vector<16x64xf32>
      %cst_71 = arith.constant 0.707106769 : f32
      %160 = vector.broadcast %cst_71 : f32 to vector<16x64xf32>
      %161 = arith.mulf %157, %160 : vector<16x64xf32>
      %162 = math.erf %161 : vector<16x64xf32>
      %cst_72 = arith.constant 1.000000e+00 : f32
      %163 = vector.broadcast %cst_72 : f32 to vector<16x64xf32>
      %164 = arith.addf %163, %162 : vector<16x64xf32>
      %165 = arith.mulf %159, %164 : vector<16x64xf32>
      %166 = arith.truncf %165 : vector<16x64xf32> to vector<16x64xbf16>
      %cst_73 = arith.constant dense<0.000000e+00> : vector<16x32xf32>
      %167 = tpu.matmul %166, %20, %cst_73 {dimension_numbers = #tpu.dot_dimension_numbers<[1], [0], [0], [1], [0, 0, 1, 1], [], []>} : vector<16x64xbf16>, vector<64x32xbf16>, vector<16x32xf32> -> vector<16x32xf32>
      %168 = vector.broadcast %21 : vector<1x32xf32> to vector<16x32xf32>
      %169 = arith.addf %167, %168 : vector<16x32xf32>
      %170 = arith.addf %131, %169 : vector<16x32xf32>
      scf.yield %170 : vector<16x32xf32>
    }
    %c0_33 = arith.constant 0 : index
    %c0_34 = arith.constant 0 : index
    %24 = vector.load %arg16[%c0_33, %c0_34] : memref<1x32xf32, #tpu.memory_space<vmem>>, vector<1x32xf32>
    %c0_35 = arith.constant 0 : index
    %c0_36 = arith.constant 0 : index
    %25 = vector.load %arg17[%c0_35, %c0_36] : memref<1x32xf32, #tpu.memory_space<vmem>>, vector<1x32xf32>
    %cst_37 = arith.constant dense<0.000000e+00> : vector<16xf32>
    %26 = vector.multi_reduction <add>, %23, %cst_37 [1] : vector<16x32xf32> to vector<16xf32>
    %27 = vector.shape_cast %26 : vector<16xf32> to vector<16x1xf32>
    %cst_38 = arith.constant 3.200000e+01 : f32
    %28 = vector.broadcast %cst_38 : f32 to vector<16x1xf32>
    %29 = arith.divf %27, %28 : vector<16x1xf32>
    %30 = vector.broadcast %29 : vector<16x1xf32> to vector<16x32xf32>
    %31 = arith.subf %23, %30 : vector<16x32xf32>
    %32 = arith.mulf %31, %31 : vector<16x32xf32>
    %cst_39 = arith.constant dense<0.000000e+00> : vector<16xf32>
    %33 = vector.multi_reduction <add>, %32, %cst_39 [1] : vector<16x32xf32> to vector<16xf32>
    %34 = vector.shape_cast %33 : vector<16xf32> to vector<16x1xf32>
    %cst_40 = arith.constant 3.200000e+01 : f32
    %35 = vector.broadcast %cst_40 : f32 to vector<16x1xf32>
    %36 = arith.divf %34, %35 : vector<16x1xf32>
    %37 = vector.broadcast %29 : vector<16x1xf32> to vector<16x32xf32>
    %38 = arith.subf %23, %37 : vector<16x32xf32>
    %cst_41 = arith.constant 9.99999974E-6 : f32
    %39 = vector.broadcast %cst_41 : f32 to vector<16x1xf32>
    %40 = arith.addf %36, %39 : vector<16x1xf32>
    %41 = math.rsqrt %40 : vector<16x1xf32>
    %42 = vector.broadcast %41 : vector<16x1xf32> to vector<16x32xf32>
    %43 = arith.mulf %38, %42 : vector<16x32xf32>
    %44 = vector.broadcast %24 : vector<1x32xf32> to vector<16x32xf32>
    %45 = arith.mulf %43, %44 : vector<16x32xf32>
    %46 = vector.broadcast %25 : vector<1x32xf32> to vector<16x32xf32>
    %47 = arith.addf %45, %46 : vector<16x32xf32>
    %48 = vector.broadcast %5 : vector<16x1xf32> to vector<16x32xf32>
    %49 = arith.mulf %47, %48 : vector<16x32xf32>
    %c0_42 = arith.constant 0 : index
    %c0_43 = arith.constant 0 : index
    %c0_44 = arith.constant 0 : index
    %50 = vector.load %arg18[%c0_42, %c0_43, %c0_44] : memref<1x16x32xf32, #tpu.memory_space<vmem>>, vector<1x16x32xf32>
    %51 = vector.shape_cast %50 : vector<1x16x32xf32> to vector<16x32xf32>
    %52 = vector.shape_cast %49 : vector<16x32xf32> to vector<1x16x32xf32>
    tpu.vector_store %arg18[%c0_42, %c0_43, %c0_44], %52 {strides = array<i32>} : memref<1x16x32xf32, #tpu.memory_space<vmem>>, vector<1x16x32xf32>,
    return
  }
  func.func @transform_0(%arg0: i32) -> (i32, i32, i32) {
    %c0_i32 = arith.constant 0 : i32
    %c0_i32_0 = arith.constant 0 : i32
    %c0_i32_1 = arith.constant 0 : i32
    return %arg0, %c0_i32, %c0_i32_0 : i32, i32, i32
  }
  func.func @transform_1(%arg0: i32) -> (i32, i32, i32) {
    %c0_i32 = arith.constant 0 : i32
    %c0_i32_0 = arith.constant 0 : i32
    %c0_i32_1 = arith.constant 0 : i32
    return %arg0, %c0_i32, %c0_i32_0 : i32, i32, i32
  }
  func.func @transform_2(%arg0: i32) -> (i32, i32, i32) {
    %c0_i32 = arith.constant 0 : i32
    %c0_i32_0 = arith.constant 0 : i32
    %c0_i32_1 = arith.constant 0 : i32
    return %arg0, %c0_i32, %c0_i32_0 : i32, i32, i32
  }
  func.func @transform_3(%arg0: i32) -> (i32, i32) {
    %c0_i32 = arith.constant 0 : i32
    %c0_i32_0 = arith.constant 0 : i32
    %c0_i32_1 = arith.constant 0 : i32
    return %c0_i32, %c0_i32_0 : i32, i32
  }
  func.func @transform_4(%arg0: i32) -> (i32, i32) {
    %c0_i32 = arith.constant 0 : i32
    %c0_i32_0 = arith.constant 0 : i32
    %c0_i32_1 = arith.constant 0 : i32
    return %c0_i32, %c0_i32_0 : i32, i32
  }
  func.func @transform_5(%arg0: i32) -> (i32, i32) {
    %c0_i32 = arith.constant 0 : i32
    %c0_i32_0 = arith.constant 0 : i32
    %c0_i32_1 = arith.constant 0 : i32
    return %c0_i32, %c0_i32_0 : i32, i32
  }
  func.func @transform_6(%arg0: i32) -> (i32, i32) {
    %c0_i32 = arith.constant 0 : i32
    %c0_i32_0 = arith.constant 0 : i32
    %c0_i32_1 = arith.constant 0 : i32
    return %c0_i32, %c0_i32_0 : i32, i32
  }
  func.func @transform_7(%arg0: i32) -> (i32, i32) {
    %c0_i32 = arith.constant 0 : i32
    %c0_i32_0 = arith.constant 0 : i32
    %c0_i32_1 = arith.constant 0 : i32
    return %c0_i32, %c0_i32_0 : i32, i32
  }
  func.func @transform_8(%arg0: i32) -> (i32, i32) {
    %c0_i32 = arith.constant 0 : i32
    %c0_i32_0 = arith.constant 0 : i32
    %c0_i32_1 = arith.constant 0 : i32
    return %c0_i32, %c0_i32_0 : i32, i32
  }
  func.func @transform_9(%arg0: i32) -> (i32, i32) {
    %c0_i32 = arith.constant 0 : i32
    %c0_i32_0 = arith.constant 0 : i32
    %c0_i32_1 = arith.constant 0 : i32
    return %c0_i32, %c0_i32_0 : i32, i32
  }
  func.func @transform_10(%arg0: i32) -> (i32, i32) {
    %c0_i32 = arith.constant 0 : i32
    %c0_i32_0 = arith.constant 0 : i32
    %c0_i32_1 = arith.constant 0 : i32
    return %c0_i32, %c0_i32_0 : i32, i32
  }
  func.func @transform_11(%arg0: i32) -> (i32, i32) {
    %c0_i32 = arith.constant 0 : i32
    %c0_i32_0 = arith.constant 0 : i32
    %c0_i32_1 = arith.constant 0 : i32
    return %c0_i32, %c0_i32_0 : i32, i32
  }
  func.func @transform_12(%arg0: i32) -> (i32, i32) {
    %c0_i32 = arith.constant 0 : i32
    %c0_i32_0 = arith.constant 0 : i32
    %c0_i32_1 = arith.constant 0 : i32
    return %c0_i32, %c0_i32_0 : i32, i32
  }
  func.func @transform_13(%arg0: i32) -> (i32, i32) {
    %c0_i32 = arith.constant 0 : i32
    %c0_i32_0 = arith.constant 0 : i32
    %c0_i32_1 = arith.constant 0 : i32
    return %c0_i32, %c0_i32_0 : i32, i32
  }
  func.func @transform_14(%arg0: i32) -> (i32, i32) {
    %c0_i32 = arith.constant 0 : i32
    %c0_i32_0 = arith.constant 0 : i32
    %c0_i32_1 = arith.constant 0 : i32
    return %c0_i32, %c0_i32_0 : i32, i32
  }
  func.func @transform_15(%arg0: i32) -> (i32, i32) {
    %c0_i32 = arith.constant 0 : i32
    %c0_i32_0 = arith.constant 0 : i32
    %c0_i32_1 = arith.constant 0 : i32
    return %c0_i32, %c0_i32_0 : i32, i32
  }
  func.func @transform_16(%arg0: i32) -> (i32, i32) {
    %c0_i32 = arith.constant 0 : i32
    %c0_i32_0 = arith.constant 0 : i32
    %c0_i32_1 = arith.constant 0 : i32
    return %c0_i32, %c0_i32_0 : i32, i32
  }
  func.func @transform_17(%arg0: i32) -> (i32, i32, i32) {
    %c0_i32 = arith.constant 0 : i32
    %c0_i32_0 = arith.constant 0 : i32
    %c0_i32_1 = arith.constant 0 : i32
    return %arg0, %c0_i32, %c0_i32_0 : i32, i32, i32
  }
}

</mosaic_0001>

<bundles_post_ra>
// kernel: _lambda_.1
= control target key start
LH: loop header
LB: loop body
LE: loop exit
PB: predicated region body
PF: predicated region fallthrough
CT: control target
= control target key end

     0   :  { %s3825_s0 = inlined_call_operand.hbm [shape: f32[2,16,32], index: 0, kind: input, shape index: {}]   ;;  %s3826_s1 = inlined_call_operand.hbm [shape: f32[2,1,16], index: 1, kind: input, shape index: {}]   ;;  %s3827_s2 = inlined_call_operand.hbm [shape: f32[2,16,1], index: 2, kind: input, shape index: {}]   ;;  %s3828_s3 = inlined_call_operand.hbm [shape: f32[1,32], index: 3, kind: input, shape index: {}]   ;;  %s3829_s4 = inlined_call_operand.hbm [shape: f32[1,32], index: 4, kind: input, shape index: {}]   ;;  %s3830_s5 = inlined_call_operand.hbm [shape: bf16[32,96], index: 5, kind: input, shape index: {}]   ;;  %s3831_s6 = inlined_call_operand.hbm [shape: f32[1,96], index: 6, kind: input, shape index: {}]   ;;  %s3832_s7 = inlined_call_operand.hbm [shape: bf16[32,32], index: 7, kind: input, shape index: {}]   ;;  %s3833_s8 = inlined_call_operand.hbm [shape: f32[1,32], index: 8, kind: input, shape index: {}]   ;;  %s3834_s9 = inlined_call_operand.hbm [shape: f32[1,32], index: 9, kind: input, shape index: {}]   ;;  %s3835_s10 = inlined_call_operand.hbm [shape: f32[1,32], index: 10, kind: input, shape index: {}]   ;;  %s3836_s11 = inlined_call_operand.hbm [shape: bf16[32,64], index: 11, kind: input, shape index: {}]   ;;  %s3837_s12 = inlined_call_operand.hbm [shape: f32[1,64], index: 12, kind: input, shape index: {}]   ;;  %s3838_s13 = inlined_call_operand.hbm [shape: bf16[64,32], index: 13, kind: input, shape index: {}]   ;;  %s3839_s14 = inlined_call_operand.hbm [shape: f32[1,32], index: 14, kind: input, shape index: {}]   ;;  %s3840_s15 = inlined_call_operand.hbm [shape: f32[1,32], index: 15, kind: input, shape index: {}]   ;;  %s3841_s16 = inlined_call_operand.hbm [shape: f32[1,32], index: 16, kind: input, shape index: {}]   ;;  %s3842_s17 = inlined_call_operand.hbm [shape: f32[2,16,32], index: 17, kind: output, shape index: {}]  }
   0x1   :  { %3867 = sst [smem:[#allocation44_spill]] %s3825_s0 }
   0x2   :  { %3868 = sst [smem:[#allocation45_spill]] %s3826_s1 }
   0x3   :  { %3869 = sst [smem:[#allocation46_spill]] %s3827_s2 }
   0x4   :  { %3870 = sst [smem:[#allocation47_spill]] %s3828_s3 }
   0x5   :  { %3871 = sst [smem:[#allocation48_spill]] %s3829_s4 }
   0x6   :  { %3872 = sst [smem:[#allocation49_spill]] %s3830_s5 }
   0x7   :  { %3873 = sst [smem:[#allocation50_spill]] %s3831_s6 }
   0x8   :  { %3874 = sst [smem:[#allocation51_spill]] %s3832_s7 }
   0x9   :  { %3875 = sst [smem:[#allocation52_spill]] %s3833_s8 }
   0xa   :  { %3876 = sst [smem:[#allocation53_spill]] %s3834_s9 }
   0xb   :  { %3877 = sst [smem:[#allocation54_spill]] %s3835_s10 }
   0xc   :  { %3878 = sst [smem:[#allocation55_spill]] %s3836_s11 }
   0xd   :  { %3879 = sst [smem:[#allocation56_spill]] %s3837_s12 }
   0xe   :  { %3880 = sst [smem:[#allocation57_spill]] %s3838_s13 }
   0xf   :  { %3881 = sst [smem:[#allocation58_spill]] %s3839_s14 }
  0x10   :  { %3882 = sst [smem:[#allocation59_spill]] %s3840_s15 }
  0x11   :  { %3883 = sst [smem:[#allocation60_spill]] %s3841_s16 }
  0x12   :  { %3884 = sst [smem:[#allocation61_spill]] %s3842_s17 }
  0x13   :  { %22 = vsyncpa [#allocation3], 0 }
  0x14   :  { %24 = vsyncpa [#allocation3 + $0x1], 0 }
  0x15   :  { %25 = vsyncpa [#allocation6], 0 }
  0x16   :  { %27 = vsyncpa [#allocation6 + $0x1], 0 }
  0x17   :  { %28 = vsyncpa [#allocation9], 0 }
  0x18   :  { %29 = vsyncpa [#allocation12], 0 }
  0x19   :  { %30 = vsyncpa [#allocation15], 0 }
  0x1a   :  { %31 = vsyncpa [#allocation18], 0 }
  0x1b   :  { %32 = vsyncpa [#allocation21], 0 }
  0x1c   :  { %33 = vsyncpa [#allocation24], 0 }
  0x1d   :  { %34 = vsyncpa [#allocation27], 0 }
  0x1e   :  { %35 = vsyncpa [#allocation4], 0 }
  0x1f   :  { %37 = vsyncpa [#allocation4 + $0x1], 0  ;;  %s3028_s24 = smov 0   ;;  %s3030_s25 = smov 0  }
  0x20   :  { %s3032_s26 = smov 0   ;;  %s3034_s27 = smov 0  }
  0x21 LB: > { %3885 = sst [smem:[#allocation40_spill]] %s2888_s26  ;;  %s2906_s28 = smov [#allocation8]   ;;  %s2892_s27 = sphi %s3034_s27, %s3944_s27   ;;  %s2888_s26 = sphi %s3032_s26, %s3946_s26   ;;  %s2884_s25 = sphi %s3030_s25, %s3948_s25   ;;  %s2880_s24 = sphi %s3028_s24, %s3947_s24  }
  0x22   : > { %s459_s29 = sshll.u32 %s2906_s28, 4  ;;  %s3049_s0 = sadd.s32 4294967295, %s2892_s27   ;;  %s3054_s29 = int_to_ptr.vmem [resolvable:$true] %s459_s29 }
  0x23   : > { %p1866_p0 = scmp.ge.s32.totalorder %s2892_s27, 1  ;;  %p3851_p1 = scmp.eq.s32.totalorder %s3049_s0, 0 }
  0x24   : > { %p446_p2 = scmp.lt.s32.totalorder %s2892_s27, 3  ;;  %s2907_s18 = smov [#allocation11]  }
  0x25   : > { %s480_s19 = sshll.u32 %s2907_s18, 4  ;;  %s2908_s20 = smov [#allocation14]   ;;  %s3063_s19 = int_to_ptr.vmem [resolvable:$true] %s480_s19 }
  0x26   : > { %p3056_p3 = pnand %p1866_p0, %p446_p2  ;;  %s504_s21 = sshll.u32 %s2908_s20, 4  ;;  %s3071_s21 = int_to_ptr.vmem [resolvable:$true] %s504_s21 }
  0x27   : > { %s3889_s3 = sld [smem:[#allocation47_spill]] }
  0x28   : > { %s3886_s30 = scalar_select %p3056_p3, 1, 0 }
  0x29   : > { %p2095_p5 = pneg %p3056_p3 }
  0x2a   : > { %3887 = sst [smem:[#allocation41_spill]] %s3886_s30 }
  0x2b   : > { %p3067_p6 = pnand %p2095_p5, %p3851_p1 }
  0x2d   : > { %s3888_s1 = scalar_select %p3067_p6, 1, 0 }
  0x2e   : > { %s2300_s28 = scalar_lea.hbm %s3889_s3, 16  ;;  %p3081_p8 = pneg %p3067_p6 }
  0x2f   : > { %p2301_p7 = scmp.ne.s32.totalorder %s3889_s3, %s2300_s28  ;;  %p2307_p11 = scmp.lt.u32.totalorder %s2300_s28, %s3889_s3 }
  0x30   : > { %s3890_s18 = scalar_select %p3081_p8, 1, 0 }
  0x31   : > { %p2303_p9 = pnand %p3081_p8, %p2301_p7 }
  0x33   : > { %p2304_p10 = pneg %p2303_p9 }
  0x35   : > { %p2309_p12 = pnand %p2307_p11, %p2304_p10 }
  0x37   : > { %2312 = shalt.err (!%p2309_p12)
}
  0x38   : > { %s2313_s17 = scalar_lea.vmem %s3054_s29, 16  ;;  %s2320_s30 = scalar_lea.vmem %s3054_s29, 32 }
  0x39   : > { %p2314_p13 = scmp.ne.s32.totalorder %s3054_s29, %s2313_s17  ;;  %p2321_p5 = scmp.lt.s32.totalorder %s3054_s29, %s3054_s29 }
  0x3a   : > { %p2322_p7 = scmp.lt.s32.totalorder %s2320_s30, %s2313_s17 }
  0x3b   : > { %p2316_p0 = pnand %p2314_p13, %p3081_p8 }
  0x3c   : > { %p2323_p9 = por %p2322_p7, %p2321_p5 }
  0x3d   : > { %p2317_p2 = pneg %p2316_p0 }
  0x3f   : > { %p2324_p4 = pnand %p2323_p9, %p2317_p2 }
  0x41   : > { %2327 = shalt.err (!%p2324_p4)
}
  0x42   : > { %2098 = dma.hbm_to_vmem [thread:$0]  (!%p3067_p6), %s3889_s3, 16, %s3054_s29, [#allocation9]  }
  0x43   : > { %s3891_s5 = sld [smem:[#allocation49_spill]] }
  0x49   : > { %s2328_s20 = scalar_lea.hbm %s3891_s5, 256 }
  0x4a   : > { %p2329_p10 = scmp.ne.s32.totalorder %s3891_s5, %s2328_s20  ;;  %p2335_p4 = scmp.lt.u32.totalorder %s2328_s20, %s3891_s5 }
  0x4c   : > { %p2331_p11 = pnand %p2329_p10, %p3081_p8 }
  0x4e   : > { %p2332_p12 = pneg %p2331_p11 }
  0x50   : > { %p2337_p13 = pnand %p2335_p4, %p2332_p12 }
  0x52   : > { %2340 = shalt.err (!%p2337_p13)
}
  0x53   : > { %s2341_s29 = scalar_lea.vmem %s3063_s19, 256  ;;  %p2349_p7 = scmp.lt.s32.totalorder %s3063_s19, %s3063_s19 }
  0x54   : > { %p2342_p0 = scmp.ne.s32.totalorder %s3063_s19, %s2341_s29  ;;  %p2350_p9 = scmp.lt.s32.totalorder %s2341_s29, %s2341_s29 }
  0x56   : > { %p2344_p2 = pnand %p2342_p0, %p3081_p8  ;;  %p2351_p10 = por %p2350_p9, %p2349_p7 }
  0x58   : > { %p2345_p5 = pneg %p2344_p2 }
  0x5a   : > { %p2352_p11 = pnand %p2351_p10, %p2345_p5 }
  0x5c   : > { %2355 = shalt.err (!%p2352_p11)
}
  0x5d   : > { %s2909_s14 = smov 64   ;;  %s2910_s16 = smov 4  }
  0x5e   : > { %2104 = dma.hbm_to_vmem [thread:$0]  (!%p3067_p6), %s3891_s5, 256, %s3063_s19, [#allocation12], %s2909_s14, %s2909_s14, %s2910_s16  }
  0x5f   : > { %s3892_s7 = sld [smem:[#allocation51_spill]] }
  0x65   : > { %s2356_s20 = scalar_lea.hbm %s3892_s7, 256 }
  0x66   : > { %p2357_p12 = scmp.ne.s32.totalorder %s3892_s7, %s2356_s20  ;;  %p2363_p0 = scmp.lt.u32.totalorder %s2356_s20, %s3892_s7 }
  0x68   : > { %p2359_p4 = pnand %p2357_p12, %p3081_p8 }
  0x6a   : > { %p2360_p13 = pneg %p2359_p4 }
  0x6c   : > { %p2365_p2 = pnand %p2363_p0, %p2360_p13 }
  0x6e   : > { %2368 = shalt.err (!%p2365_p2)
}
  0x6f   : > { %s2369_s19 = scalar_lea.vmem %s3071_s21, 256  ;;  %p2377_p10 = scmp.lt.s32.totalorder %s3071_s21, %s3071_s21 }
  0x70   : > { %p2370_p5 = scmp.ne.s32.totalorder %s3071_s21, %s2369_s19  ;;  %p2378_p11 = scmp.lt.s32.totalorder %s2369_s19, %s2369_s19 }
  0x72   : > { %p2372_p7 = pnand %p2370_p5, %p3081_p8  ;;  %p2379_p12 = por %p2378_p11, %p2377_p10 }
  0x74   : > { %p2373_p9 = pneg %p2372_p7 }
  0x76   : > { %p2380_p4 = pnand %p2379_p12, %p2373_p9 }
  0x78   : > { %2383 = shalt.err (!%p2380_p4)
}
  0x79   : > { %2110 = dma.hbm_to_vmem [thread:$0]  (!%p3067_p6), %s3892_s7, 256, %s3071_s21, [#allocation15], %s2909_s14, %s2909_s14, %s2910_s16  }
  0x7a   : > { %s2911_s22 = smov [#allocation17]   ;;  %s2912_s28 = smov [#allocation20]  }
  0x7b   : > { %s529_s23 = sshll.u32 %s2911_s22, 4  ;;  %s550_s20 = sshll.u32 %s2912_s28, 4  ;;  %s530_s23 = int_to_ptr.vmem [resolvable:$true] %s529_s23  ;;  %s551_s20 = int_to_ptr.vmem [resolvable:$true] %s550_s20 }
  0x7c   : > { %s3893_s9 = sld [smem:[#allocation53_spill]] }
  0x82   : > { %s2384_s29 = scalar_lea.hbm %s3893_s9, 16 }
  0x83   : > { %p2385_p13 = scmp.ne.s32.totalorder %s3893_s9, %s2384_s29  ;;  %p2391_p5 = scmp.lt.u32.totalorder %s2384_s29, %s3893_s9 }
  0x85   : > { %p2387_p0 = pnand %p2385_p13, %p3081_p8 }
  0x87   : > { %p2388_p2 = pneg %p2387_p0 }
  0x89   : > { %p2393_p7 = pnand %p2391_p5, %p2388_p2 }
  0x8b   : > { %2396 = shalt.err (!%p2393_p7)
}
  0x8c   : > { %s2397_s21 = scalar_lea.vmem %s530_s23, 16  ;;  %s2404_s2 = scalar_lea.vmem %s530_s23, 32 }
  0x8d   : > { %p2398_p9 = scmp.ne.s32.totalorder %s530_s23, %s2397_s21  ;;  %p2405_p12 = scmp.lt.s32.totalorder %s530_s23, %s530_s23 }
  0x8e   : > { %p2406_p4 = scmp.lt.s32.totalorder %s2404_s2, %s2397_s21 }
  0x8f   : > { %p2400_p10 = pnand %p2398_p9, %p3081_p8 }
  0x90   : > { %p2407_p1 = por %p2406_p4, %p2405_p12 }
  0x91   : > { %p2401_p11 = pneg %p2400_p10 }
  0x93   : > { %p2408_p3 = pnand %p2407_p1, %p2401_p11 }
  0x95   : > { %2411 = shalt.err (!%p2408_p3)
}
  0x96   : > { %2116 = dma.hbm_to_vmem [thread:$0]  (!%p3067_p6), %s3893_s9, 16, %s530_s23, [#allocation18]  }
  0x97   : > { %s3894_s11 = sld [smem:[#allocation55_spill]] }
  0x9d   : > { %s2412_s17 = scalar_lea.hbm %s3894_s11, 256 }
  0x9e   : > { %p2413_p13 = scmp.ne.s32.totalorder %s3894_s11, %s2412_s17  ;;  %p2419_p3 = scmp.lt.u32.totalorder %s2412_s17, %s3894_s11 }
  0xa0   : > { %p2415_p0 = pnand %p2413_p13, %p3081_p8 }
  0xa2   : > { %p2416_p1 = pneg %p2415_p0 }
  0xa4   : > { %p2421_p2 = pnand %p2419_p3, %p2416_p1 }
  0xa6   : > { %2424 = shalt.err (!%p2421_p2)
}
  0xa7   : > { %s2425_s21 = scalar_lea.vmem %s551_s20, 256  ;;  %p2433_p10 = scmp.lt.s32.totalorder %s551_s20, %s551_s20 }
  0xa8   : > { %p2426_p5 = scmp.ne.s32.totalorder %s551_s20, %s2425_s21  ;;  %p2434_p11 = scmp.lt.s32.totalorder %s2425_s21, %s2425_s21 }
  0xaa   : > { %p2428_p7 = pnand %p2426_p5, %p3081_p8  ;;  %p2435_p12 = por %p2434_p11, %p2433_p10 }
  0xac   : > { %p2429_p9 = pneg %p2428_p7 }
  0xae   : > { %p2436_p4 = pnand %p2435_p12, %p2429_p9 }
  0xb0   : > { %2439 = shalt.err (!%p2436_p4)
}
  0xb1   : > { %2122 = dma.hbm_to_vmem [thread:$0]  (!%p3067_p6), %s3894_s11, 256, %s551_s20, [#allocation21], %s2909_s14, %s2909_s14, %s2910_s16  }
  0xb2   : > { %s2913_s5 = smov [#allocation23]   ;;  %s2914_s12 = smov [#allocation26]  }
  0xb3   : > { %s574_s22 = sshll.u32 %s2913_s5, 4  ;;  %s599_s28 = sshll.u32 %s2914_s12, 4  ;;  %s575_s22 = int_to_ptr.vmem [resolvable:$true] %s574_s22  ;;  %s600_s28 = int_to_ptr.vmem [resolvable:$true] %s599_s28 }
  0xb4   : > { %s3895_s13 = sld [smem:[#allocation57_spill]] }
  0xba   : > { %s2440_s29 = scalar_lea.hbm %s3895_s13, 512 }
  0xbb   : > { %p2441_p13 = scmp.ne.s32.totalorder %s3895_s13, %s2440_s29  ;;  %p2447_p3 = scmp.lt.u32.totalorder %s2440_s29, %s3895_s13 }
  0xbd   : > { %p2443_p0 = pnand %p2441_p13, %p3081_p8 }
  0xbf   : > { %p2444_p1 = pneg %p2443_p0 }
  0xc1   : > { %p2449_p2 = pnand %p2447_p3, %p2444_p1 }
  0xc3   : > { %2452 = shalt.err (!%p2449_p2)
}
  0xc4   : > { %s2453_s20 = scalar_lea.vmem %s575_s22, 512  ;;  %p2461_p10 = scmp.lt.s32.totalorder %s575_s22, %s575_s22 }
  0xc5   : > { %p2454_p5 = scmp.ne.s32.totalorder %s575_s22, %s2453_s20  ;;  %p2462_p11 = scmp.lt.s32.totalorder %s2453_s20, %s2453_s20 }
  0xc7   : > { %p2456_p7 = pnand %p2454_p5, %p3081_p8  ;;  %p2463_p12 = por %p2462_p11, %p2461_p10 }
  0xc9   : > { %p2457_p9 = pneg %p2456_p7 }
  0xcb   : > { %p2464_p4 = pnand %p2463_p12, %p2457_p9 }
  0xcd   : > { %2467 = shalt.err (!%p2464_p4)
}
  0xce   : > { %2128 = dma.hbm_to_vmem [thread:$0]  (!%p3067_p6), %s3895_s13, 512, %s575_s22, [#allocation24], %s2909_s14, %s2909_s14, %s2910_s16  }
  0xcf   : > { %s3896_s15 = sld [smem:[#allocation59_spill]] }
  0xd5   : > { %s2468_s30 = scalar_lea.hbm %s3896_s15, 16 }
  0xd6   : > { %p2469_p13 = scmp.ne.s32.totalorder %s3896_s15, %s2468_s30  ;;  %p2475_p3 = scmp.lt.u32.totalorder %s2468_s30, %s3896_s15 }
  0xd8   : > { %p2471_p0 = pnand %p2469_p13, %p3081_p8 }
  0xda   : > { %p2472_p1 = pneg %p2471_p0 }
  0xdc   : > { %p2477_p2 = pnand %p2475_p3, %p2472_p1 }
  0xde   : > { %2480 = shalt.err (!%p2477_p2)
}
  0xdf   : > { %s2481_s23 = scalar_lea.vmem %s600_s28, 16  ;;  %s2488_s14 = scalar_lea.vmem %s600_s28, 32 }
  0xe0   : > { %p2482_p5 = scmp.ne.s32.totalorder %s600_s28, %s2481_s23  ;;  %p2489_p10 = scmp.lt.s32.totalorder %s600_s28, %s600_s28 }
  0xe1   : > { %p2490_p11 = scmp.lt.s32.totalorder %s2488_s14, %s2481_s23 }
  0xe2   : > { %p2484_p7 = pnand %p2482_p5, %p3081_p8 }
  0xe3   : > { %p2491_p12 = por %p2490_p11, %p2489_p10 }
  0xe4   : > { %p2485_p9 = pneg %p2484_p7 }
  0xe6   : > { %p2492_p4 = pnand %p2491_p12, %p2485_p9 }
  0xe8   : > { %2495 = shalt.err (!%p2492_p4)
}
  0xe9   : > { %2134 = dma.hbm_to_vmem [thread:$0]  (!%p3067_p6), %s3896_s15, 16, %s600_s28, [#allocation27]  }
  0xea   : > { %s1865_s20 = sadd.s32 4294967294, %s2892_s27   ;;  %s3235_s2 = sadd.s32 1, %s2892_s27  }
  0xeb   : > { %3897 = sst [smem:[#allocation42_spill]] %s3235_s2  ;;  %s50_s5 = sadd.s32 1, %s2888_s26 }
  0xec   : > { %s47_s12 = ssub.s32 %s2892_s27, %s3235_s2  ;;  %p57_p13 = scmp.ne.s32.totalorder %s2888_s26, %s2884_s25 }
  0xed   : > { %p48_p0 = scmp.eq.s32.totalorder %s47_s12, 0  ;;  %p58_p1 = scmp.eq.s32.totalorder %s2892_s27, 0 }
  0xee   : > { %p63_p3 = scmp.ne.s32.totalorder %s2884_s25, %s2880_s24  ;;  %p433_p2 = scmp.eq.s32.totalorder %s3049_s0, 1 }
  0xef   : > { %s3247_s17 = scalar_select %p48_p0, %s2888_s26, %s50_s5  }
  0xf0   : > { %p59_p5 = por %p58_p1, %p57_p13  ;;  %p3899_p7 = scmp.eq.s32.totalorder %s3049_s0, 0 }
  0xf1   : > { %3898 = sst [smem:[#allocation43_spill]] %s3247_s17  ;;  %p3255_p10 = por %p433_p2, %p57_p13 }
  0xf2   : > { %p3251_p9 = por %p3899_p7, %p63_p3  ;;  %p439_p11 = scmp.eq.s32.totalorder %s1865_s20, 1 }
  0xf3   : > { %s3901_s30 = scalar_select %p3255_p10, 1, 0 }
  0xf4   : > { %s3900_s28 = scalar_select %p3251_p9, 1, 0 }
  0xf5   : > { %p2166_p12 = scmp.lt.s32.totalorder %s2892_s27, 2  ;;  %s3261_s29 = sand.u32 1, %s2888_s26  }
  0xf6   : > { %p3263_p4 = por %p439_p11, %p63_p3  ;;  %s642_s23 = sand.u32 1, %s2892_s27  }
  0xf7   : > { %p3268_p0 = pnand %p2166_p12, %p59_p5  ;;  %s1885_s14 = sshll.u32 %s2892_s27, 4 }
  0xf8   : > { %s3902_s19 = scalar_select %p3263_p4, 1, 0 }
  0xf9   : > { %s3903_s21 = scalar_select %p3268_p0, 1, 0 }
  0xfa   : > { %s3904_s20 = sld [smem:[#allocation45_spill]]  ;;  %s645_s12 = scalar_lea.vmem [#allocation5], %s3261_s29 }
  0xfb   : > { %s652_s7 = sshll.u32 %s645_s12, 4  ;;  %s3282_s3 = scalar_lea.sflag [#allocation6], %s642_s23  ;;  %s3280_s7 = int_to_ptr.vmem [resolvable:$true] %s652_s7 }
  0xfc   : > { %p3288_p1 = pneg %p3268_p0 }
  0xfe   : > { %s3905_s11 = scalar_select %p3288_p1, 1, 0 }
 0x100   : > { %s3277_s5 = scalar_lea.hbm %s3904_s20, %s1885_s14  ;;  %s2501_s22 = scalar_lea.hbm %s3904_s20, 32 }
 0x101   : > { %s2496_s9 = scalar_lea.hbm %s3277_s5, 16  ;;  %p2502_p5 = scmp.lt.u32.totalorder %s3277_s5, %s3904_s20 }
 0x102   : > { %p2497_p13 = scmp.ne.s32.totalorder %s3277_s5, %s2496_s9  ;;  %p2503_p7 = scmp.lt.u32.totalorder %s2501_s22, %s2496_s9 }
 0x103   : > { %p2505_p12 = scmp.lt.u32.totalorder %s2496_s9, %s3277_s5 }
 0x104   : > { %p2499_p3 = pnand %p3288_p1, %p2497_p13  ;;  %p2504_p11 = por %p2503_p7, %p2502_p5 }
 0x106   : > { %p2500_p2 = pneg %p2499_p3  ;;  %p2506_p4 = por %p2505_p12, %p2504_p11 }
 0x108   : > { %p2507_p10 = pnand %p2506_p4, %p2500_p2 }
 0x10a   : > { %2510 = shalt.err (!%p2507_p10)
}
 0x10b   : > { %s2511_s23 = scalar_lea.vmem %s3280_s7, 16  ;;  %s2915_s14 = smov [#allocation5]  }
 0x10c   : > { %p2512_p13 = scmp.ne.s32.totalorder %s3280_s7, %s2511_s23  ;;  %s2516_s16 = sshll.u32 %s2915_s14, 4  ;;  %s2517_s16 = int_to_ptr.vmem [resolvable:$false] %s2516_s16 }
 0x10d   : > { %s2518_s13 = scalar_lea.vmem %s2517_s16, 32  ;;  %p2519_p6 = scmp.lt.s32.totalorder %s3280_s7, %s2517_s16 }
 0x10e   : > { %p2514_p3 = pnand %p2512_p13, %p3288_p1  ;;  %p2520_p8 = scmp.lt.s32.totalorder %s2518_s13, %s2511_s23 }
 0x110   : > { %p2515_p9 = pneg %p2514_p3  ;;  %p2521_p5 = por %p2520_p8, %p2519_p6 }
 0x112   : > { %p2522_p7 = pnand %p2521_p5, %p2515_p9 }
 0x114   : > { %2525 = shalt.err (!%p2522_p7)
}
 0x115   : > { %2144 = dma.hbm_to_vmem [thread:$0]  (!%p3268_p0), %s3277_s5, 16, %s3280_s7, %s3282_s3  }
 0x116   : > { %s3906_s9 = sshll.u32 %s3261_s29, 4  ;;  %s2916_s14 = smov [#allocation10]  }
 0x117   : > { %s663_s22 = scalar_lea.vmem [#allocation7], %s3906_s9  ;;  %s470_s15 = sshll.u32 %s2916_s14, 4  ;;  %s471_s15 = int_to_ptr.vmem [resolvable:$true] %s470_s15 }
 0x118   : > { %s670_s12 = sshll.u32 %s663_s22, 4  ;;  %s3907_s4 = sld [smem:[#allocation48_spill]]  ;;  %s3314_s12 = int_to_ptr.vmem [resolvable:$true] %s670_s12 }
 0x119   : > { %p3908_p8 = scmp.ne.s32.totalorder %s3890_s18, 0 }
 0x11e   : > { %s2526_s13 = scalar_lea.hbm %s3907_s4, 16 }
 0x11f   : > { %p2527_p6 = scmp.ne.s32.totalorder %s3907_s4, %s2526_s13  ;;  %p2533_p4 = scmp.lt.u32.totalorder %s2526_s13, %s3907_s4 }
 0x121   : > { %p2529_p9 = pnand %p2527_p6, %p3908_p8 }
 0x123   : > { %p2530_p10 = pneg %p2529_p9 }
 0x125   : > { %p2535_p2 = pnand %p2533_p4, %p2530_p10 }
 0x127   : > { %2538 = shalt.err (!%p2535_p2)
}
 0x128   : > { %s2539_s9 = scalar_lea.vmem %s471_s15, 16  ;;  %s2546_s22 = scalar_lea.vmem %s471_s15, 32 }
 0x129   : > { %p2540_p11 = scmp.ne.s32.totalorder %s471_s15, %s2539_s9  ;;  %p2547_p3 = scmp.lt.s32.totalorder %s471_s15, %s471_s15 }
 0x12a   : > { %p2548_p5 = scmp.lt.s32.totalorder %s2546_s22, %s2539_s9 }
 0x12b   : > { %p2542_p12 = pnand %p2540_p11, %p3908_p8 }
 0x12c   : > { %p2549_p7 = por %p2548_p5, %p2547_p3 }
 0x12d   : > { %p2543_p13 = pneg %p2542_p12 }
 0x12f   : > { %p2550_p0 = pnand %p2549_p7, %p2543_p13 }
 0x131   : > { %2553 = shalt.err (!%p2550_p0)
}
 0x132   : > { %p3909_p6 = scmp.ne.s32.totalorder %s3888_s1, 0  ;;  %s2917_s14 = smov [#allocation13]  }
 0x133   : > { %s494_s23 = sshll.u32 %s2917_s14, 4  ;;  %s2918_s16 = smov [#allocation16]   ;;  %s495_s23 = int_to_ptr.vmem [resolvable:$true] %s494_s23 }
 0x134   : > { %2101 = dma.hbm_to_vmem [thread:$0]  (!%p3909_p6), %s3907_s4, 16, %s471_s15, [#allocation9]  }
 0x135   : > { %s518_s13 = sshll.u32 %s2918_s16, 4  ;;  %s3910_s6 = sld [smem:[#allocation50_spill]]  ;;  %s519_s13 = int_to_ptr.vmem [resolvable:$true] %s518_s13 }
 0x13b   : > { %s2554_s26 = scalar_lea.hbm %s3910_s6, 16 }
 0x13c   : > { %p2555_p0 = scmp.ne.s32.totalorder %s3910_s6, %s2554_s26  ;;  %p2561_p4 = scmp.lt.u32.totalorder %s2554_s26, %s3910_s6 }
 0x13e   : > { %p2557_p9 = pnand %p2555_p0, %p3908_p8 }
 0x140   : > { %p2558_p10 = pneg %p2557_p9 }
 0x142   : > { %p2563_p2 = pnand %p2561_p4, %p2558_p10 }
 0x144   : > { %2566 = shalt.err (!%p2563_p2)
}
 0x145   : > { %s2567_s15 = scalar_lea.vmem %s495_s23, 16  ;;  %s2574_s20 = scalar_lea.vmem %s495_s23, 32 }
 0x146   : > { %p2568_p11 = scmp.ne.s32.totalorder %s495_s23, %s2567_s15  ;;  %p2575_p3 = scmp.lt.s32.totalorder %s495_s23, %s495_s23 }
 0x147   : > { %p2576_p5 = scmp.lt.s32.totalorder %s2574_s20, %s2567_s15 }
 0x148   : > { %p2570_p12 = pnand %p2568_p11, %p3908_p8 }
 0x149   : > { %p2577_p7 = por %p2576_p5, %p2575_p3 }
 0x14a   : > { %p2571_p13 = pneg %p2570_p12 }
 0x14c   : > { %p2578_p1 = pnand %p2577_p7, %p2571_p13 }
 0x14e   : > { %2581 = shalt.err (!%p2578_p1)
}
 0x14f   : > { %2107 = dma.hbm_to_vmem [thread:$0]  (!%p3909_p6), %s3910_s6, 16, %s495_s23, [#allocation12]  }
 0x150   : > { %s3911_s8 = sld [smem:[#allocation52_spill]] }
 0x156   : > { %s2582_s7 = scalar_lea.hbm %s3911_s8, 16 }
 0x157   : > { %p2583_p0 = scmp.ne.s32.totalorder %s3911_s8, %s2582_s7  ;;  %p2589_p1 = scmp.lt.u32.totalorder %s2582_s7, %s3911_s8 }
 0x159   : > { %p2585_p9 = pnand %p2583_p0, %p3908_p8 }
 0x15b   : > { %p2586_p10 = pneg %p2585_p9 }
 0x15d   : > { %p2591_p4 = pnand %p2589_p1, %p2586_p10 }
 0x15f   : > { %2594 = shalt.err (!%p2591_p4)
}
 0x160   : > { %s2595_s15 = scalar_lea.vmem %s519_s13, 16  ;;  %s2602_s23 = scalar_lea.vmem %s519_s13, 32 }
 0x161   : > { %p2596_p2 = scmp.ne.s32.totalorder %s519_s13, %s2595_s15  ;;  %p2603_p13 = scmp.lt.s32.totalorder %s519_s13, %s519_s13 }
 0x162   : > { %p2604_p3 = scmp.lt.s32.totalorder %s2602_s23, %s2595_s15 }
 0x163   : > { %p2598_p11 = pnand %p2596_p2, %p3908_p8 }
 0x164   : > { %p2605_p5 = por %p2604_p3, %p2603_p13 }
 0x165   : > { %p2599_p12 = pneg %p2598_p11 }
 0x167   : > { %p2606_p7 = pnand %p2605_p5, %p2599_p12 }
 0x169   : > { %2609 = shalt.err (!%p2606_p7)
}
 0x16a   : > { %2113 = dma.hbm_to_vmem [thread:$0]  (!%p3909_p6), %s3911_s8, 16, %s519_s13, [#allocation15]  }
 0x16b   : > { %s2919_s16 = smov [#allocation19]   ;;  %s2920_s2 = smov [#allocation22]  }
 0x16c   : > { %s540_s26 = sshll.u32 %s2919_s16, 4  ;;  %s564_s7 = sshll.u32 %s2920_s2, 4  ;;  %s541_s26 = int_to_ptr.vmem [resolvable:$true] %s540_s26  ;;  %s565_s7 = int_to_ptr.vmem [resolvable:$true] %s564_s7 }
 0x16d   : > { %s3912_s10 = sld [smem:[#allocation54_spill]] }
 0x173   : > { %s2610_s22 = scalar_lea.hbm %s3912_s10, 16 }
 0x174   : > { %p2611_p0 = scmp.ne.s32.totalorder %s3912_s10, %s2610_s22  ;;  %p2617_p1 = scmp.lt.u32.totalorder %s2610_s22, %s3912_s10 }
 0x176   : > { %p2613_p9 = pnand %p2611_p0, %p3908_p8 }
 0x178   : > { %p2614_p10 = pneg %p2613_p9 }
 0x17a   : > { %p2619_p4 = pnand %p2617_p1, %p2614_p10 }
 0x17c   : > { %2622 = shalt.err (!%p2619_p4)
}
 0x17d   : > { %s2623_s13 = scalar_lea.vmem %s541_s26, 16  ;;  %s2630_s14 = scalar_lea.vmem %s541_s26, 32 }
 0x17e   : > { %p2624_p2 = scmp.ne.s32.totalorder %s541_s26, %s2623_s13  ;;  %p2631_p13 = scmp.lt.s32.totalorder %s541_s26, %s541_s26 }
 0x17f   : > { %p2632_p3 = scmp.lt.s32.totalorder %s2630_s14, %s2623_s13 }
 0x180   : > { %p2626_p11 = pnand %p2624_p2, %p3908_p8 }
 0x181   : > { %p2633_p5 = por %p2632_p3, %p2631_p13 }
 0x182   : > { %p2627_p12 = pneg %p2626_p11 }
 0x184   : > { %p2634_p7 = pnand %p2633_p5, %p2627_p12 }
 0x186   : > { %2637 = shalt.err (!%p2634_p7)
}
 0x187   : > { %2119 = dma.hbm_to_vmem [thread:$0]  (!%p3909_p6), %s3912_s10, 16, %s541_s26, [#allocation18]  }
 0x188   : > { %s3913_s22 = sld [smem:[#allocation56_spill]] }
 0x18e   : > { %s2638_s17 = scalar_lea.hbm %s3913_s22, 16 }
 0x18f   : > { %p2639_p0 = scmp.ne.s32.totalorder %s3913_s22, %s2638_s17  ;;  %p2645_p1 = scmp.lt.u32.totalorder %s2638_s17, %s3913_s22 }
 0x191   : > { %p2641_p9 = pnand %p2639_p0, %p3908_p8 }
 0x193   : > { %p2642_p10 = pneg %p2641_p9 }
 0x195   : > { %p2647_p4 = pnand %p2645_p1, %p2642_p10 }
 0x197   : > { %2650 = shalt.err (!%p2647_p4)
}
 0x198   : > { %s2651_s14 = scalar_lea.vmem %s565_s7, 16  ;;  %s2658_s26 = scalar_lea.vmem %s565_s7, 32 }
 0x199   : > { %p2652_p2 = scmp.ne.s32.totalorder %s565_s7, %s2651_s14  ;;  %p2659_p13 = scmp.lt.s32.totalorder %s565_s7, %s565_s7 }
 0x19a   : > { %p2660_p3 = scmp.lt.s32.totalorder %s2658_s26, %s2651_s14 }
 0x19b   : > { %p2654_p11 = pnand %p2652_p2, %p3908_p8 }
 0x19c   : > { %p2661_p5 = por %p2660_p3, %p2659_p13 }
 0x19d   : > { %p2655_p12 = pneg %p2654_p11 }
 0x19f   : > { %p2662_p7 = pnand %p2661_p5, %p2655_p12 }
 0x1a1   : > { %2665 = shalt.err (!%p2662_p7)
}
 0x1a2   : > { %2125 = dma.hbm_to_vmem [thread:$0]  (!%p3909_p6), %s3913_s22, 16, %s565_s7, [#allocation21]  }
 0x1a3   : > { %s2921_s5 = smov [#allocation25]   ;;  %s2922_s17 = smov [#allocation28]  }
 0x1a4   : > { %s588_s9 = sshll.u32 %s2921_s5, 4  ;;  %s610_s15 = sshll.u32 %s2922_s17, 4  ;;  %s589_s9 = int_to_ptr.vmem [resolvable:$true] %s588_s9  ;;  %s611_s15 = int_to_ptr.vmem [resolvable:$true] %s610_s15 }
 0x1a5   : > { %s3914_s13 = sld [smem:[#allocation58_spill]] }
 0x1ab   : > { %s2666_s4 = scalar_lea.hbm %s3914_s13, 16 }
 0x1ac   : > { %p2667_p0 = scmp.ne.s32.totalorder %s3914_s13, %s2666_s4  ;;  %p2673_p1 = scmp.lt.u32.totalorder %s2666_s4, %s3914_s13 }
 0x1ae   : > { %p2669_p9 = pnand %p2667_p0, %p3908_p8 }
 0x1b0   : > { %p2670_p10 = pneg %p2669_p9 }
 0x1b2   : > { %p2675_p4 = pnand %p2673_p1, %p2670_p10 }
 0x1b4   : > { %2678 = shalt.err (!%p2675_p4)
}
 0x1b5   : > { %s2679_s7 = scalar_lea.vmem %s589_s9, 16  ;;  %s2686_s2 = scalar_lea.vmem %s589_s9, 32 }
 0x1b6   : > { %p2680_p2 = scmp.ne.s32.totalorder %s589_s9, %s2679_s7  ;;  %p2687_p13 = scmp.lt.s32.totalorder %s589_s9, %s589_s9 }
 0x1b7   : > { %p2688_p3 = scmp.lt.s32.totalorder %s2686_s2, %s2679_s7 }
 0x1b8   : > { %p2682_p11 = pnand %p2680_p2, %p3908_p8 }
 0x1b9   : > { %p2689_p5 = por %p2688_p3, %p2687_p13 }
 0x1ba   : > { %p2683_p12 = pneg %p2682_p11 }
 0x1bc   : > { %p2690_p7 = pnand %p2689_p5, %p2683_p12 }
 0x1be   : > { %2693 = shalt.err (!%p2690_p7)
}
 0x1bf   : > { %2131 = dma.hbm_to_vmem [thread:$0]  (!%p3909_p6), %s3914_s13, 16, %s589_s9, [#allocation24]  }
 0x1c0   : > { %s3915_s23 = sld [smem:[#allocation60_spill]] }
 0x1c6   : > { %s2694_s20 = scalar_lea.hbm %s3915_s23, 16 }
 0x1c7   : > { %p2695_p0 = scmp.ne.s32.totalorder %s3915_s23, %s2694_s20  ;;  %p2701_p1 = scmp.lt.u32.totalorder %s2694_s20, %s3915_s23 }
 0x1c9   : > { %p2697_p9 = pnand %p2695_p0, %p3908_p8 }
 0x1cb   : > { %p2698_p10 = pneg %p2697_p9 }
 0x1cd   : > { %p2703_p4 = pnand %p2701_p1, %p2698_p10 }
 0x1cf   : > { %2706 = shalt.err (!%p2703_p4)
}
 0x1d0   : > { %s2707_s2 = scalar_lea.vmem %s611_s15, 16  ;;  %s2714_s9 = scalar_lea.vmem %s611_s15, 32 }
 0x1d1   : > { %p2708_p2 = scmp.ne.s32.totalorder %s611_s15, %s2707_s2  ;;  %p2715_p13 = scmp.lt.s32.totalorder %s611_s15, %s611_s15 }
 0x1d2   : > { %p2716_p3 = scmp.lt.s32.totalorder %s2714_s9, %s2707_s2 }
 0x1d3   : > { %p2710_p11 = pnand %p2708_p2, %p3908_p8 }
 0x1d4   : > { %p2717_p5 = por %p2716_p3, %p2715_p13 }
 0x1d5   : > { %p2711_p12 = pneg %p2710_p11 }
 0x1d7   : > { %p2718_p7 = pnand %p2717_p5, %p2711_p12 }
 0x1d9   : > { %2721 = shalt.err (!%p2718_p7)
}
 0x1da   : > { %2137 = dma.hbm_to_vmem [thread:$0]  (!%p3909_p6), %s3915_s23, 16, %s611_s15, [#allocation27]  }
 0x1db   : > { %s1941_s4 = sshll.u32 %s2892_s27, 8  ;;  %s3916_s20 = sld [smem:[#allocation44_spill]] }
 0x1dc   : > { %s3917_s26 = sshll.u32 %s3261_s29, 4  ;;  %s3918_s9 = sld [smem:[#allocation46_spill]] }
 0x1dd   : > { %s625_s1 = scalar_lea.vmem [#allocation2], %s3917_s26  ;;  %s622_s15 = scalar_lea.sflag [#allocation3], %s3261_s29 }
 0x1de   : > { %s632_s16 = sshll.u32 %s625_s1, 4  ;;  %p3919_p6 = scmp.ne.s32.totalorder %s3905_s11, 0  ;;  %s3450_s16 = int_to_ptr.vmem [resolvable:$true] %s632_s16 }
 0x1e1   : > { %s3446_s14 = scalar_lea.hbm %s3916_s20, %s1941_s4  ;;  %s2727_s8 = scalar_lea.hbm %s3916_s20, 512 }
 0x1e2   : > { %s3455_s5 = scalar_lea.hbm %s3918_s9, %s1941_s4  ;;  %s2722_s17 = scalar_lea.hbm %s3446_s14, 256 }
 0x1e3   : > { %p2723_p8 = scmp.ne.s32.totalorder %s3446_s14, %s2722_s17  ;;  %p2728_p10 = scmp.lt.u32.totalorder %s3446_s14, %s3916_s20 }
 0x1e4   : > { %p2729_p1 = scmp.lt.u32.totalorder %s2727_s8, %s2722_s17  ;;  %p2731_p2 = scmp.lt.u32.totalorder %s2722_s17, %s3446_s14 }
 0x1e5   : > { %p2725_p0 = pnand %p2723_p8, %p3919_p6 }
 0x1e6   : > { %p2730_p4 = por %p2729_p1, %p2728_p10 }
 0x1e7   : > { %p2726_p9 = pneg %p2725_p0 }
 0x1e8   : > { %p2732_p11 = por %p2731_p2, %p2730_p4 }
 0x1ea   : > { %p2733_p12 = pnand %p2732_p11, %p2726_p9 }
 0x1ec   : > { %2736 = shalt.err (!%p2733_p12)
}
 0x1ed   : > { %s2737_s4 = scalar_lea.vmem %s3450_s16, 256  ;;  %s2923_s1 = smov [#allocation2]  }
 0x1ee   : > { %p2738_p13 = scmp.ne.s32.totalorder %s3450_s16, %s2737_s4  ;;  %s2742_s7 = sshll.u32 %s2923_s1, 4  ;;  %s2743_s7 = int_to_ptr.vmem [resolvable:$false] %s2742_s7 }
 0x1ef   : > { %s2744_s10 = scalar_lea.vmem %s2743_s7, 512  ;;  %p2745_p7 = scmp.lt.s32.totalorder %s3450_s16, %s2743_s7 }
 0x1f0   : > { %p2740_p3 = pnand %p2738_p13, %p3919_p6  ;;  %p2746_p8 = scmp.lt.s32.totalorder %s2744_s10, %s2737_s4 }
 0x1f2   : > { %p2741_p5 = pneg %p2740_p3  ;;  %p2747_p0 = por %p2746_p8, %p2745_p7 }
 0x1f4   : > { %p2748_p10 = pnand %p2747_p0, %p2741_p5 }
 0x1f6   : > { %2751 = shalt.err (!%p2748_p10)
}
 0x1f7   : > { %s2924_s8 = smov 128   ;;  %s2925_s2 = smov 8  }
 0x1f8   : > { %p3920_p9 = scmp.ne.s32.totalorder %s3903_s21, 0  ;;  %s2752_s17 = scalar_lea.hbm %s3455_s5, 256 }
 0x1f9   : > { %p2753_p1 = scmp.ne.s32.totalorder %s3455_s5, %s2752_s17  ;;  %s2757_s26 = scalar_lea.hbm %s3918_s9, 512 }
 0x1fa   : > { %2141 = dma.hbm_to_vmem [thread:$0]  (!%p3920_p9), %s3446_s14, 256, %s3450_s16, %s622_s15, %s2924_s8, %s2924_s8, %s2925_s2  }
 0x1fb   : > { %p2755_p4 = pnand %p2753_p1, %p3919_p6  ;;  %p2758_p11 = scmp.lt.u32.totalorder %s3455_s5, %s3918_s9 }
 0x1fc   : > { %p2759_p12 = scmp.lt.u32.totalorder %s2757_s26, %s2752_s17  ;;  %p2761_p3 = scmp.lt.u32.totalorder %s2752_s17, %s3455_s5 }
 0x1fd   : > { %p2756_p2 = pneg %p2755_p4 }
 0x1fe   : > { %p2760_p13 = por %p2759_p12, %p2758_p11 }
 0x200   : > { %p2762_p5 = por %p2761_p3, %p2760_p13 }
 0x202   : > { %p2763_p7 = pnand %p2762_p5, %p2756_p2 }
 0x204   : > { %2766 = shalt.err (!%p2763_p7)
}
 0x205   : > { %s2767_s29 = scalar_lea.vmem %s3314_s12, 256  ;;  %s2926_s14 = smov [#allocation7]  }
 0x206   : > { %p2768_p8 = scmp.ne.s32.totalorder %s3314_s12, %s2767_s29  ;;  %s2772_s16 = sshll.u32 %s2926_s14, 4  ;;  %s2773_s16 = int_to_ptr.vmem [resolvable:$false] %s2772_s16 }
 0x207   : > { %s2774_s15 = scalar_lea.vmem %s2773_s16, 512  ;;  %p2775_p1 = scmp.lt.s32.totalorder %s3314_s12, %s2773_s16 }
 0x208   : > { %p2770_p0 = pnand %p2768_p8, %p3919_p6  ;;  %p2776_p4 = scmp.lt.s32.totalorder %s2774_s15, %s2767_s29 }
 0x20a   : > { %p2771_p10 = pneg %p2770_p0  ;;  %p2777_p11 = por %p2776_p4, %p2775_p1 }
 0x20c   : > { %p2778_p12 = pnand %p2777_p11, %p2771_p10 }
 0x20e   : > { %2781 = shalt.err (!%p2778_p12)
}
 0x20f   : > { %2147 = dma.hbm_to_vmem [thread:$0]  (!%p3920_p9), %s3455_s5, 256, %s3314_s12, %s3282_s3, %s2924_s8, %s2924_s8, %s2925_s2  }
 0x210   : > { %s3921_s11 = sld [smem:[#allocation41_spill]] }
 0x216   : > { %p3922_p6 = scmp.ne.s32.totalorder %s3921_s11, 0 }
 0x217   : > { %s3512_s7 = sand.u32 (!%p3922_p6), 1, %s2884_s25   ;;  %p3923_p2 = scmp.ne.s32.totalorder (!%p3922_p6), %s3900_s28, 0 }
 0x218   : > { %682 = sbr.rel (%p3922_p6) target bundleno = 3321 (0xcf9), region = 88  ;;  %s3515_s10 = sshll.u32 (!%p3922_p6), %s3512_s7, 4 }
 0x219   : > { %s685_s21 = scalar_lea.sflag (!%p3922_p6), [#allocation3], %s3512_s7  ;;  %s688_s17 = scalar_lea.vmem (!%p3922_p6), [#allocation2], %s3515_s10 }
 0x21f   : > { %2839 = dma.done.wait (%p3923_p2), %s685_s21, 256  }
 0x220   : > { %2841 = vsyncadd (%p3923_p2), %s685_s21, 4294967040  ;;  %s693_s3 = sand.u32 1, %s3049_s0   ;;  %s696_s5 = scalar_lea.vmem [#allocation5], %s3512_s7 }
 0x221   : > { %s694_s12 = scalar_lea.sflag [#allocation6], %s693_s3 }
 0x222   : > { %2843 = dma.done.wait (%p3923_p2), %s694_s12, 272  }
 0x223   : > { %2845 = vsyncadd (%p3923_p2), %s694_s12, 4294967024  ;;  %s705_s8 = scalar_lea.vmem [#allocation7], %s3515_s10  ;;  %p3924_p9 = scmp.eq.s32.totalorder %s3049_s0, 0 }
 0x225   : > { %2847 = dma.done.wait (%p3924_p9), [#allocation9], 32   ;;  %p3925_p13 = pmov %p3924_p9 }
 0x226   : > { %p3926_p3 = pmov %p3924_p9 }
 0x227   : > { %2849 = vsyncadd (%p3925_p13), [#allocation9], 4294967264 }
 0x228   : > { %2851 = dma.done.wait (%p3926_p3), [#allocation12], 272   ;;  %p3927_p5 = pmov %p3926_p3 }
 0x229   : > { %p3928_p7 = pmov %p3926_p3 }
 0x22a   : > { %2853 = vsyncadd (%p3927_p5), [#allocation12], 4294967024 }
 0x22b   : > { %2855 = dma.done.wait (%p3928_p7), [#allocation15], 272   ;;  %p3929_p8 = pmov %p3926_p3 }
 0x22c   : > { %p3930_p0 = pmov %p3926_p3 }
 0x22d   : > { %2857 = vsyncadd (%p3929_p8), [#allocation15], 4294967024 }
 0x22e   : > { %2859 = dma.done.wait (%p3930_p0), [#allocation18], 32   ;;  %p3931_p10 = pmov %p3930_p0 }
 0x22f   : > { %p3932_p1 = pmov %p3930_p0 }
 0x230   : > { %2861 = vsyncadd (%p3931_p10), [#allocation18], 4294967264 }
 0x231   : > { %2863 = dma.done.wait (%p3932_p1), [#allocation21], 272   ;;  %p3933_p4 = pmov %p3930_p0 }
 0x232   : > { %p3934_p11 = pmov %p3930_p0 }
 0x233   : > { %2865 = vsyncadd (%p3933_p4), [#allocation21], 4294967024 }
 0x234   : > { %2867 = dma.done.wait (%p3934_p11), [#allocation24], 528   ;;  %p3935_p12 = pmov %p3930_p0 }
 0x235   : > { %p3936_p6 = pmov %p3930_p0 }
 0x236   : > { %2869 = vsyncadd (%p3935_p12), [#allocation24], 4294966768 }
 0x237   : > { %2871 = dma.done.wait (%p3936_p6), [#allocation27], 32   ;;  %p3937_p2 = pmov %p3930_p0 }
 0x238   : > { %v822_v0 = vld [vmem:[%s688_s17] sm:$0xff]   ;;  %v823_v1 = vld [vmem:[%s688_s17 + $0x8] sm:$0xff]   ;;  %s3621_s28 = scalar_lea.vmem [#allocation29], %s3515_s10  ;;  %s3627_s2 = smov 0  }
 0x239   : > { %2873 = vsyncadd (%p3937_p2), [#allocation27], 4294967264  ;;  %v824_v2 = vld [vmem:[%s696_s5] sm:$0x1]  ;;  %v3558_v3 = vld [vmem:[%s705_s8] sm:$0xff] }
 0x23a   : > { %v3560_v4 = vld [vmem:[%s705_s8 + $0x8] sm:$0xff]  ;;  %v827_v5 = vsub.f32 1.0, %v824_v2  ;;  %v3562_v6 = vld [vmem:[#allocation8] ss:$0 sm:$0xff]  ;;  %v3564_v7 = vld [vmem:[#allocation10] ss:$0 sm:$0xff] }
 0x23b   : > { %v3566_v8 = vld [vmem:[#allocation11] sm:$0xf]  ;;  %v3568_v9 = vld [vmem:[#allocation11 + $0x4] sm:$0xf]  ;;  %v3572_v11 = vld [vmem:[#allocation11 + $0x8] sm:$0xf] }
 0x23c   : > { %v3570_v10 = vmul.f32 1000000.0, %v827_v5  ;;  %v3574_v12 = vld [vmem:[#allocation11 + $0xc] sm:$0xf]  ;;  %v3576_v13 = vld [vmem:[#allocation13] ss:$0 sm:$0xff] }
 0x23d   : > { %v3578_v14 = vld [vmem:[#allocation14] sm:$0xf]  ;;  %v3580_v15 = vld [vmem:[#allocation14 + $0x4] sm:$0xf]  ;;  %v3582_v16 = vld [vmem:[#allocation14 + $0x8] sm:$0xf] }
 0x23e   : > { %v3584_v17 = vld [vmem:[#allocation14 + $0xc] sm:$0xf]  ;;  %v3586_v18 = vld [vmem:[#allocation16] ss:$0 sm:$0xff]  ;;  %v3588_v19 = vld [vmem:[#allocation17] ss:$0 sm:$0xff] }
 0x23f   : > { %v3590_v20 = vld [vmem:[#allocation19] ss:$0 sm:$0xff]  ;;  %v3592_v21 = vld [vmem:[#allocation20] sm:$0xf]  ;;  %v3594_v22 = vld [vmem:[#allocation20 + $0x4] sm:$0xf] }
 0x240   : > { %v3596_v23 = vld [vmem:[#allocation20 + $0x8] sm:$0xf]  ;;  %v3598_v24 = vld [vmem:[#allocation20 + $0xc] sm:$0xf]  ;;  %v3600_v25 = vld [vmem:[#allocation22] ss:$0 sm:$0xff] }
 0x241   : > { %v3602_v26 = vld [vmem:[#allocation23] sm:$0xf]  ;;  %v3604_v27 = vld [vmem:[#allocation23 + $0x4] sm:$0xf]  ;;  %v3606_v28 = vld [vmem:[#allocation23 + $0x8] sm:$0xf] }
 0x242   : > { %v3608_v29 = vld [vmem:[#allocation23 + $0xc] sm:$0xf]  ;;  %v3610_v30 = vld [vmem:[#allocation23 + $0x10] sm:$0xf]  ;;  %v3612_v31 = vld [vmem:[#allocation23 + $0x14] sm:$0xf] }
 0x243   : > { %v3614_v32 = vld [vmem:[#allocation23 + $0x18] sm:$0xf]  ;;  %v3616_v33 = vld [vmem:[#allocation23 + $0x1c] sm:$0xf]  ;;  %v3618_v34 = vld [vmem:[#allocation25] ss:$0 sm:$0xff] }
 0x244 LB: >> { %vm865_vm0 = vcmask 261120   ;;  %v1910_v47 = vcombine.low %v3566_v8, %v3568_v9  ;;  %v2927_v48 = vmov 0.0   ;;  %vm2928_vm1 = vmmov 0   ;;  %s2929_s18 = smov 80   ;;  %s2930_s6 = smov 96   ;;  %s2904_s2 = sphi %s3627_s2, %s862_s2   ;;  %v2900_v0 = vphi %v822_v0, %v3939_v0   ;;  %v2896_v1 = vphi %v823_v1, %v3938_v1  }
 0x245   : >> { %v866_v35 = vsel %vm865_vm0, %v2900_v0, 0.0  ;;  %v869_v36 = vsel %vm865_vm0, %v2896_v1, 0.0  ;;  %1967 = vmatprep.subr.bf16.mxu1 %v2927_v48  ;;  %1971 = vmatprep.mubr.msk.bf16.mxu1 %vm2928_vm1, %v2927_v48  ;;  %v1911_v49 = vcombine.low %v3572_v11, %v3574_v12  ;;  %s2931_s26 = smov 112   ;;  %vm976_vm2 = vcmask 130048   ;;  %s2932_s4 = smov 64  }
 0x246   : >> { %867 = vadd.xlane.f32.xlu0 %v866_v35  ;;  %1968 = vmatpush3.bf16.msra.mxu1 %v1910_v47  ;;  %s2933_s1 = smov 48   ;;  %vm1487_vm3 = vcmask 523264   ;;  %s862_s2 = sadd.s32 1, %s2904_s2  }
 0x247   : >> { %1981 = vmatprep.subr.bf16.mxu0 %v2927_v48  ;;  %1969 = vmatprep.subr.bf16.mxu1 %v2927_v48  ;;  %p859_p9 = scmp.ge.s32.totalorder %s862_s2, 2  }
 0x248   : >> { %1983 = vmatprep.mubr.msk.bf16.mxu0 %vm2928_vm1, %v2927_v48  ;;  %s1943_s29 = sshll.u32 (%p859_p9), %s3049_s0, 8  ;;  %s1608_s14 = sshll.u32 (%p859_p9), %s3621_s28, 4  ;;  %s3779_s14 = int_to_ptr.vmem [resolvable:$true] %s1608_s14 }
 0x249   : > { %s3940_s11 = sld [smem:[#allocation61_spill]] (%p859_p9)  ;;  %s1595_s21 = scalar_lea.sflag (%p859_p9), [#allocation4], %s3512_s7 }
 0x24a   : >> { %870 = vadd.xlane.f32.xlu0 %v869_v36  ;;  %1970 = vmatpush3.bf16.msra.mxu1 %v1911_v49  ;;  %s2782_s0 = scalar_lea.vmem (%p859_p9), %s3779_s14, 256  ;;  %p3941_p3 = scmp.ne.s32.totalorder (%p859_p9), %s3901_s30, 0 }
 0x24b   : >> { %1975 = vmatprep.subr.bf16.mxu1 %v2927_v48  ;;  %p2783_p13 = scmp.ne.s32.totalorder (%p859_p9), %s3779_s14, %s2782_s0  ;;  %s2935_s17 = smov (%p859_p9), [#allocation29]  }
 0x24c   : > { %s2786_s3 = sshll.u32 (%p859_p9), %s2935_s17, 4  ;;  %s2787_s3 = int_to_ptr.vmem [resolvable:$false] %s2786_s3 }
 0x24d   : > { %p2784_p5 = pnand (%p859_p9), %p2783_p13, %p3941_p3  ;;  %s2788_s12 = scalar_lea.vmem (%p859_p9), %s2787_s3, 512 }
 0x24e   : > { %p2789_p8 = scmp.lt.s32.totalorder (%p859_p9), %s3779_s14, %s2787_s3  ;;  %p2790_p0 = scmp.lt.s32.totalorder (%p859_p9), %s2788_s12, %s2782_s0 }
 0x24f   : > { %s3777_s10 = scalar_lea.hbm (%p859_p9), %s3940_s11, %s1943_s29  ;;  %p2785_p7 = pneg (%p859_p9), %p2784_p5 }
 0x250   : > { %p2791_p10 = por (%p859_p9), %p2790_p0, %p2789_p8 }
 0x252   : > { %p2792_p1 = pnand (%p859_p9), %p2791_p10, %p2785_p7 }
 0x2d3   : >> { %v868_v37 = vpop.xlane.xlu0 %867 }
 0x2d4   : >> { %v873_v38 = vmul.f32 0.03125, %v868_v37 }
 0x2d6   : >> { %v875_v39 = vsub.f32 %v2900_v0, %v873_v38 }
 0x2d7   : >> { %v871_v40 = vpop.xlane.xlu0 %870 }
 0x2d8   : >> { %v874_v41 = vmul.f32 0.03125, %v871_v40  ;;  %v877_v42 = vmul.f32 %v875_v39, %v875_v39 }
 0x2da   : >> { %v876_v43 = vsub.f32 %v2896_v1, %v874_v41  ;;  %v879_v44 = vsel %vm865_vm0, %v877_v42, 0.0 }
 0x2db   : >> { %880 = vadd.xlane.f32.xlu1 %v879_v44 }
 0x2dc   : >> { %v878_v45 = vmul.f32 %v876_v43, %v876_v43 }
 0x2de   : >> { %v882_v46 = vsel %vm865_vm0, %v878_v45, 0.0 }
 0x2df   : >> { %883 = vadd.xlane.f32.xlu1 %v882_v46  ;;  %v1027_v46 = vlaneseq }
 0x2e1   : >> { %v1028_v47 = vshrl.u32 %v1027_v46, 7 }
 0x2e3   : >> { %v1029_v49 = vsub.s32 0, %v1028_v47 }
 0x368   : >> { %v881_v50 = vpop.xlane.xlu1 %880 }
 0x369   : >> { %v885_v51 = vmul.f32 0.03125, %v881_v50  ;;  %v1030_v50 = vrot.slane %v3570_v10, %v1029_v49 }
 0x36b   : >> { %v887_v52 = vadd.f32 1e-05, %v885_v51 }
 0x36c   : >> { %v884_v53 = vpop.xlane.xlu1 %883 }
 0x36d   : >> { %2266 = vrsqrt.f32 %v887_v52  ;;  %v886_v54 = vmul.f32 0.03125, %v884_v53 }
 0x36f   : >> { %v888_v55 = vadd.f32 1e-05, %v886_v54 }
 0x371   : >> { %2268 = vrsqrt.f32 %v888_v55 }
 0x377   : >> { %v2267_v56 = vpop.eup %2266 }
 0x378   : >> { %v891_v57 = vmul.f32 %v2267_v56, %v875_v39 }
 0x37a   : >> { %v899_v60 = vmul.f32 %v3562_v6, %v891_v57 }
 0x37b   : >> { %v2269_v58 = vpop.eup %2268 }
 0x37c   : >> { %v892_v59 = vmul.f32 %v2269_v58, %v876_v43  ;;  %v907_v62 = vadd.f32 %v3564_v7, %v899_v60 }
 0x37e   : >> { %v900_v61 = vmul.f32 %v3562_v6, %v892_v59 }
 0x380   : >> { %v908_v63 = vadd.f32 %v3564_v7, %v900_v61 }
 0x382   : >> { %v909_v2 = vpack.c.bf16 %v908_v63, %v907_v62 }
 0x384   : >> { %1972 = vmatmul.mubr.msk.bf16.vlgmr.msra.gmra.mrb[0].mxu1 %vm865_vm0, %v909_v2 }
 0x385   : >> { %1977 = vmatprep.mubr.msk.bf16.mxu1 %vm2928_vm1, %v2927_v48 }
 0x457   : >> { %v965_v5 = vpop.f32.mrb[0].mxu1 }
 0x458   : >> { %v1973_v35 = vpop.f32.mrb[1].mxu1  ;;  %v966_v37 = vadd.f32 %v3576_v13, %v965_v5 }
 0x459   : >> { %v968_v36 = vpop.f32.mrb[2].mxu1 }
 0x45a   : >> { %v969_v38 = vadd.f32 %v3576_v13, %v968_v36  ;;  %v1974_v39 = vpop.f32.mrb[3].mxu1 }
 0x45c   : >> { %v3667_v40 = vpack.c.bf16 %v969_v38, %v966_v37 }
 0x45e   : >> { %1107 = vrot.lane.b32.xlu1 %v3667_v40, %s2929_s18  ;;  %974 = vrot.lane.b32.xlu0 %v3667_v40, %s2930_s6 }
 0x462   : >> { %1105 = vrot.lane.b32.xlu1 %v3667_v40, %s2931_s26 }
 0x4d0   : >> { %v975_v41 = vpop.permute.xlu0 %974  ;;  %v1108_v43 = vpop.permute.xlu1 %1107 }
 0x4d1   : >> { %v981_v42 = vsel %vm976_vm2, %v975_v41, 0  ;;  %v1113_v44 = vsel %vm976_vm2, %v1108_v43, 0 }
 0x4d2   : >> { %1976 = vmatpush3.bf16.xpose.msra.mxu1 %v981_v42 }
 0x4d3   : >> { %1987 = vmatprep.subr.bf16.mxu1 %v2927_v48 }
 0x4d4   : >> { %v1106_v45 = vpop.permute.xlu1 %1105 }
 0x4d9   : >> { %1978 = vmatmul.mubr.msk.bf16.vlgmr.msra.gmra.mrb[4].mxu1 %vm976_vm2, %v3667_v40 }
 0x4da   : >> { %1988 = vmatpush3.bf16.xpose.msra.mxu1 %v1113_v44  ;;  %1989 = vmatprep.mubr.msk.bf16.mxu1 %vm2928_vm1, %v2927_v48 }
 0x4db   : >> { %1999 = vmatprep.subr.bf16.mxu1 %v2927_v48 }
 0x4e1   : >> { %1990 = vmatmul.mubr.msk.bf16.vlgmr.msra.gmra.mrb[8].mxu1 %vm976_vm2, %v1106_v45 }
 0x4e2   : >> { %2001 = vmatprep.mubr.msk.bf16.mxu1 %vm2928_vm1, %v2927_v48 }
 0x5ac   : >> { %v1017_v51 = vpop.f32.mrb[4].mxu1 }
 0x5ad   : >> { %v1024_v52 = vmul.f32 0.25, %v1017_v51  ;;  %v1979_v53 = vpop.f32.mrb[5].mxu1 }
 0x5ae   : >> { %v1020_v54 = vpop.f32.mrb[6].mxu1 }
 0x5af   : >> { %v1025_v55 = vmul.f32 0.25, %v1020_v54  ;;  %v1980_v56 = vpop.f32.mrb[7].mxu1  ;;  %v1032_v57 = vsub.f32 %v1024_v52, %v1030_v50 }
 0x5b1   : >> { %v1034_v58 = vsel %vm976_vm2, %v1032_v57, -inf  ;;  %v1033_v59 = vsub.f32 %v1025_v55, %v1030_v50 }
 0x5b2   : >> { %1035 = vmax.xlane.f32.xlu1 %v1034_v58 }
 0x5b3   : >> { %v1037_v60 = vsel %vm976_vm2, %v1033_v59, -inf }
 0x5b4   : >> { %1038 = vmax.xlane.f32.xlu0 %v1037_v60  ;;  %v1149_v61 = vpop.f32.mrb[8].mxu1 }
 0x5b5   : >> { %v1156_v62 = vmul.f32 0.25, %v1149_v61  ;;  %v1991_v63 = vpop.f32.mrb[9].mxu1 }
 0x5b6   : >> { %v1152_v2 = vpop.f32.mrb[10].mxu1 }
 0x5b7   : >> { %v1157_v5 = vmul.f32 0.25, %v1152_v2  ;;  %v1992_v35 = vpop.f32.mrb[11].mxu1  ;;  %v1158_v36 = vsub.f32 %v1156_v62, %v1030_v50 }
 0x5b9   : >> { %v1160_v37 = vsel %vm976_vm2, %v1158_v36, -inf  ;;  %v1159_v38 = vsub.f32 %v1157_v5, %v1030_v50 }
 0x5ba   : >> { %1161 = vmax.xlane.f32.xlu0 %v1160_v37 }
 0x5bb   : >> { %v1163_v39 = vsel %vm976_vm2, %v1159_v38, -inf }
 0x5be   : >> { %1164 = vmax.xlane.f32.xlu0 %v1163_v39 }
 0x63f   : >> { %v1036_v41 = vpop.xlane.xlu1 %1035 }
 0x640   : >> { %v1040_v42 = vsub.f32 %v1032_v57, %v1036_v41 }
 0x641   : >> { %v1039_v43 = vpop.xlane.xlu0 %1038 }
 0x642   : >> { %v1042_v44 = vmul.f32 1.442695, %v1040_v42  ;;  %v1041_v45 = vsub.f32 %v1033_v59, %v1039_v43 }
 0x644   : >> { %2270 = vpow2.f32 %v1042_v44  ;;  %v1044_v46 = vmul.f32 1.442695, %v1041_v45 }
 0x646   : >> { %2272 = vpow2.f32 %v1044_v46 }
 0x647   : >> { %v1162_v47 = vpop.xlane.xlu0 %1161 }
 0x648   : >> { %v1166_v49 = vsub.f32 %v1158_v36, %v1162_v47  ;;  %v1919_v47 = vcombine.low %v3578_v14, %v3580_v15  ;;  %v1934_v14 = vld [vmem:[#allocation26] ss:$0 sm:$0xff] (%p859_p9) }
 0x64a   : >> { %v1168_v51 = vmul.f32 1.442695, %v1166_v49  ;;  %v1917_v49 = vcombine.low %v3582_v16, %v3584_v17  ;;  %v1935_v16 = vld [vmem:[#allocation28] ss:$0 sm:$0xff] (%p859_p9) }
 0x64b   : >> { %v1165_v52 = vpop.xlane.xlu0 %1164 }
 0x64c   : >> { %2274 = vpow2.f32 %v1168_v51  ;;  %v1167_v53 = vsub.f32 %v1159_v38, %v1165_v52  ;;  %2000 = vmatpush3.bf16.msra.mxu1 %v1917_v49 }
 0x64d   : >> { %2011 = vmatprep.subr.bf16.mxu1 %v2927_v48 }
 0x64e   : >> { %v2271_v54 = vpop.eup %2270  ;;  %v1170_v50 = vmul.f32 1.442695, %v1167_v53 }
 0x64f   : >> { %v1046_v55 = vsel %vm976_vm2, %v2271_v54, 0.0 }
 0x650   : >> { %v2273_v56 = vpop.eup %2272  ;;  %2276 = vpow2.f32 %v1170_v50  ;;  %1047 = vadd.xlane.f32.xlu1 %v1046_v55 }
 0x651   : >> { %v1049_v57 = vsel %vm976_vm2, %v2273_v56, 0.0 }
 0x652   : >> { %1050 = vadd.xlane.f32.xlu0 %v1049_v57 }
 0x656   : >> { %v2275_v58 = vpop.eup %2274 }
 0x657   : >> { %v1172_v59 = vsel %vm976_vm2, %v2275_v58, 0.0 }
 0x658   : >> { %1173 = vadd.xlane.f32.xlu1 %v1172_v59 }
 0x65a   : >> { %v2277_v60 = vpop.eup %2276 }
 0x65b   : >> { %v1175_v61 = vsel %vm976_vm2, %v2277_v60, 0.0 }
 0x65c   : >> { %1176 = vadd.xlane.f32.xlu0 %v1175_v61 }
 0x669   : >> { %1057 = vrot.lane.b32.xlu1 %v3667_v40, %s2932_s4 }
 0x672   : >> { %1183 = vrot.lane.b32.xlu0 %v3667_v40, %s2933_s1 }
 0x6dd   : >> { %v1048_v62 = vpop.xlane.xlu1 %1047 }
 0x6de   : >> { %2278 = vrcp.f32 %v1048_v62 }
 0x6df   : >> { %v1051_v63 = vpop.xlane.xlu0 %1050 }
 0x6e0   : >> { %2280 = vrcp.f32 %v1051_v63 }
 0x6e5   : >> { %v1174_v2 = vpop.xlane.xlu1 %1173 }
 0x6e6   : >> { %2282 = vrcp.f32 %v1174_v2 }
 0x6e8   : >> { %v2279_v5 = vpop.eup %2278 }
 0x6e9   : >> { %v1058_v35 = vpop.permute.xlu1 %1057  ;;  %v1177_v36 = vpop.xlane.xlu0 %1176  ;;  %v1054_v38 = vmul.f32 %v2279_v5, %v2271_v54 }
 0x6ea   : >> { %v2281_v37 = vpop.eup %2280  ;;  %2284 = vrcp.f32 %v1177_v36  ;;  %1982 = vmatpush3.bf16.msra.mxu0 %v1058_v35 }
 0x6eb   : >> { %1993 = vmatprep.subr.bf16.mxu0 %v2927_v48  ;;  %v1055_v39 = vmul.f32 %v2281_v37, %v2273_v56 }
 0x6ed   : >> { %v1184_v41 = vpop.permute.xlu0 %1183  ;;  %v1056_v42 = vpack.c.bf16 %v1055_v39, %v1054_v38 }
 0x6ef   : >> { %1984 = vmatmul.mubr.msk.bf16.vlgmr.msra.gmra.mrb[0].mxu0 %vm976_vm2, %v1056_v42 }
 0x6f0   : >> { %1994 = vmatpush3.bf16.msra.mxu0 %v1184_v41  ;;  %1995 = vmatprep.mubr.msk.bf16.mxu0 %vm2928_vm1, %v2927_v48  ;;  %v2283_v40 = vpop.eup %2282 }
 0x6f1   : >> { %2005 = vmatprep.subr.bf16.mxu0 %v2927_v48  ;;  %v1180_v44 = vmul.f32 %v2283_v40, %v2275_v58 }
 0x6f4   : >> { %v2285_v43 = vpop.eup %2284 }
 0x6f5   : >> { %v1181_v45 = vmul.f32 %v2285_v43, %v2277_v60 }
 0x6f7   : >> { %v1182_v46 = vpack.c.bf16 %v1181_v45, %v1180_v44 }
 0x6f9   : >> { %1996 = vmatmul.mubr.msk.bf16.vlgmr.msra.gmra.mrb[4].mxu0 %vm976_vm2, %v1182_v46 }
 0x6fa   : >> { %2007 = vmatprep.mubr.msk.bf16.mxu0 %vm2928_vm1, %v2927_v48  ;;  %2006 = vmatpush3.bf16.msra.mxu0 %v1919_v47 }
 0x6fb   : >> { %2019 = vmatprep.subr.bf16.mxu0 %v2927_v48 }
 0x7c2   : >> { %v1097_v51 = vpop.f32.mrb[0].mxu0 }
 0x7c3   : >> { %v1985_v52 = vpop.f32.mrb[1].mxu0 }
 0x7c4   : >> { %v1100_v53 = vpop.f32.mrb[2].mxu0 }
 0x7c5   : >> { %v1104_v54 = vpack.c.bf16 %v1100_v53, %v1097_v51  ;;  %v1986_v50 = vpop.f32.mrb[3].mxu0 }
 0x7c6   : >> { %v1925_v50 = vcombine.low %v3592_v21, %v3594_v22 }
 0x7c7   : >> { %2008 = vmatmul.mubr.msk.bf16.vlgmr.msra.gmra.mrb[8].mxu0 %vm976_vm2, %v1104_v54 }
 0x7c8   : >> { %2027 = vmatprep.mubr.msk.bf16.mxu0 %vm2928_vm1, %v2927_v48 }
 0x7cc   : >> { %v1223_v55 = vpop.f32.mrb[4].mxu0 }
 0x7cd   : >> { %v1997_v56 = vpop.f32.mrb[5].mxu0 }
 0x7ce   : >> { %v1226_v57 = vpop.f32.mrb[6].mxu0 }
 0x7cf   : >> { %v1230_v58 = vpack.c.bf16 %v1226_v57, %v1223_v55  ;;  %v1998_v59 = vpop.f32.mrb[7].mxu0  ;;  %v1926_v55 = vcombine.low %v3596_v23, %v3598_v24 }
 0x7d1   : >> { %2002 = vmatmul.mubr.msk.bf16.vlgmr.msra.gmra.mrb[12].mxu1 %vm976_vm2, %v1230_v58 }
 0x7d2   : >> { %2015 = vmatprep.mubr.msk.bf16.mxu1 %vm2928_vm1, %v2927_v48  ;;  %2012 = vmatpush3.bf16.msra.mxu1 %v1925_v50 }
 0x7d3   : >> { %2013 = vmatprep.subr.bf16.mxu1 %v2927_v48 }
 0x7d6   : >> { %2014 = vmatpush3.bf16.msra.mxu1 %v1926_v55 }
 0x89a   : >> { %v1324_v60 = vpop.f32.mrb[8].mxu0 }
 0x89b   : >> { %v2009_v61 = vpop.f32.mrb[9].mxu0 }
 0x89c   : >> { %v1327_v62 = vpop.f32.mrb[10].mxu0 }
 0x89d   : >> { %v2010_v63 = vpop.f32.mrb[11].mxu0 }
 0x8a4   : >> { %v1274_v2 = vpop.f32.mrb[12].mxu1 }
 0x8a5   : >> { %v1325_v5 = vadd.f32 %v1324_v60, %v1274_v2  ;;  %v2003_v35 = vpop.f32.mrb[13].mxu1 }
 0x8a6   : >> { %v1277_v36 = vpop.f32.mrb[14].mxu1 }
 0x8a7   : >> { %v1331_v37 = vadd.f32 %v2900_v0, %v1325_v5  ;;  %v1328_v38 = vadd.f32 %v1327_v62, %v1277_v36  ;;  %v2004_v39 = vpop.f32.mrb[15].mxu1 }
 0x8a9   : >> { %v3716_v41 = vadd.f32 %v3586_v18, %v1331_v37  ;;  %v1332_v42 = vadd.f32 %v2896_v1, %v1328_v38 }
 0x8ab   : >> { %v3720_v40 = vadd.f32 %v3586_v18, %v1332_v42  ;;  %v1341_v43 = vsel %vm865_vm0, %v3716_v41, 0.0  ;;  %v1929_v42 = vcombine.low %v3602_v26, %v3604_v27 }
 0x8ac   : >> { %1342 = vadd.xlane.f32.xlu1 %v1341_v43  ;;  %v1930_v43 = vcombine.low %v3606_v28, %v3608_v29 }
 0x8ad   : >> { %v1344_v44 = vsel %vm865_vm0, %v3720_v40, 0.0  ;;  %2020 = vmatpush3.bf16.msra.mxu0 %v1929_v42 }
 0x8ae   : >> { %1345 = vadd.xlane.f32.xlu0 %v1344_v44  ;;  %2021 = vmatprep.subr.bf16.mxu0 %v2927_v48  ;;  %v1931_v44 = vcombine.low %v3610_v30, %v3612_v31 }
 0x8b1   : >> { %2022 = vmatpush3.bf16.msra.mxu0 %v1930_v43 }
 0x8b2   : >> { %2023 = vmatprep.subr.bf16.mxu0 %v2927_v48 }
 0x8b5   : >> { %2024 = vmatpush3.bf16.msra.mxu0 %v1931_v44 }
 0x8b6   : >> { %2025 = vmatprep.subr.bf16.mxu0 %v2927_v48 }
 0x939   : >> { %v1343_v45 = vpop.xlane.xlu1 %1342 }
 0x93a   : >> { %v1347_v0 = vmul.f32 0.03125, %v1343_v45  ;;  %v1932_v45 = vcombine.low %v3614_v32, %v3616_v33 }
 0x93b   : >> { %v1346_v46 = vpop.xlane.xlu0 %1345 }
 0x93c   : >> { %v1349_v47 = vsub.f32 %v3716_v41, %v1347_v0  ;;  %v1348_v49 = vmul.f32 0.03125, %v1346_v46  ;;  %2026 = vmatpush3.bf16.msra.mxu0 %v1932_v45 }
 0x93e   : >> { %v1350_v51 = vsub.f32 %v3720_v40, %v1348_v49  ;;  %v1351_v1 = vmul.f32 %v1349_v47, %v1349_v47 }
 0x940   : >> { %v1353_v52 = vsel %vm865_vm0, %v1351_v1, 0.0  ;;  %v1352_v53 = vmul.f32 %v1350_v51, %v1350_v51 }
 0x941   : >> { %1354 = vadd.xlane.f32.xlu1 %v1353_v52 }
 0x942   : >> { %v1356_v54 = vsel %vm865_vm0, %v1352_v53, 0.0 }
 0x943   : >> { %1357 = vadd.xlane.f32.xlu0 %v1356_v54 }
 0x9ce   : >> { %v1355_v56 = vpop.xlane.xlu1 %1354 }
 0x9cf   : >> { %v1359_v57 = vmul.f32 0.03125, %v1355_v56 }
 0x9d0   : >> { %v1358_v58 = vpop.xlane.xlu0 %1357 }
 0x9d1   : >> { %v1361_v59 = vadd.f32 1e-05, %v1359_v57  ;;  %v1360_v60 = vmul.f32 0.03125, %v1358_v58 }
 0x9d3   : >> { %2286 = vrsqrt.f32 %v1361_v59  ;;  %v1362_v61 = vadd.f32 1e-05, %v1360_v60 }
 0x9d5   : >> { %2288 = vrsqrt.f32 %v1362_v61 }
 0x9dd   : >> { %v2287_v62 = vpop.eup %2286 }
 0x9de   : >> { %v1365_v63 = vmul.f32 %v2287_v62, %v1349_v47 }
 0x9df   : >> { %v2289_v2 = vpop.eup %2288 }
 0x9e0   : >> { %v1373_v5 = vmul.f32 %v3588_v19, %v1365_v63  ;;  %v1366_v35 = vmul.f32 %v2289_v2, %v1350_v51 }
 0x9e2   : >> { %v1374_v36 = vmul.f32 %v3588_v19, %v1366_v35  ;;  %v1381_v37 = vadd.f32 %v3590_v20, %v1373_v5 }
 0x9e4   : >> { %v1382_v38 = vadd.f32 %v3590_v20, %v1374_v36 }
 0x9e6   : >> { %v1383_v39 = vpack.c.bf16 %v1382_v38, %v1381_v37 }
 0x9e8   : >> { %2016 = vmatmul.mubr.msk.bf16.vlgmr.msra.gmra.mrb[16].mxu1 %vm865_vm0, %v1383_v39  ;;  %v2934_v39 = vmov (%p859_p9), 0  }
 0x9e9   : > { %2294 = vset.pattern.permute.xlu0 (%p859_p9), %v2934_v39  ;;  %2295 = vset.pattern.permute.xlu1 (%p859_p9), %v2934_v39 }
 0xabb   : >> { %v1439_v0 = vpop.f32.mrb[16].mxu1 }
 0xabc   : >> { %v1440_v46 = vadd.f32 %v3600_v25, %v1439_v0  ;;  %v2017_v47 = vpop.f32.mrb[17].mxu1 }
 0xabd   : >> { %v1442_v49 = vpop.f32.mrb[18].mxu1 }
 0xabe   : >> { %v1448_v51 = vmul.f32 0.70710677, %v1440_v46  ;;  %v1443_v1 = vadd.f32 %v3600_v25, %v1442_v49  ;;  %v2018_v52 = vpop.f32.mrb[19].mxu1  ;;  %v1446_v48 = vmul.f32 0.5, %v1440_v46 }
 0xac0   : >> { %2290 = verf.f32 %v1448_v51  ;;  %v1449_v53 = vmul.f32 0.70710677, %v1443_v1  ;;  %v1447_v56 = vmul.f32 0.5, %v1443_v1 }
 0xac2   : >> { %2292 = verf.f32 %v1449_v53 }
 0xaca   : >> { %v2291_v54 = vpop.eup %2290 }
 0xacb   : >> { %v1452_v50 = vadd.f32 1.0, %v2291_v54 }
 0xacc   : >> { %v2293_v55 = vpop.eup %2292 }
 0xacd   : >> { %v1453_v57 = vadd.f32 1.0, %v2293_v55  ;;  %v1454_v58 = vmul.f32 %v1452_v50, %v1446_v48 }
 0xacf   : >> { %v1455_v59 = vmul.f32 %v1453_v57, %v1447_v56 }
 0xad1   : >> { %v1456_v60 = vpack.c.bf16 %v1455_v59, %v1454_v58 }
 0xad3   : >> { %2028 = vmatmul.mubr.msk.bf16.vlgmr.msra.gmra.mrb[12].mxu0 %vm1487_vm3, %v1456_v60 }
 0xba6   : >> { %v1525_v61 = vpop.f32.mrb[12].mxu0 }
 0xba7   : >> { %v1526_v62 = vadd.f32 %v3618_v34, %v1525_v61  ;;  %v2029_v63 = vpop.f32.mrb[13].mxu0  ;;  %861 = sbr.rel (!%p859_p9) target bundleno = 580 (0x244), region = 220 }
 0xba8   : >> { %v1528_v2 = vpop.f32.mrb[14].mxu0 }
 0xba9   : >> { %v1532_v5 = vadd.f32 %v1526_v62, %v3716_v41   ;;  %v1529_v35 = vadd.f32 %v3618_v34, %v1528_v2  ;;  %v2030_v36 = vpop.f32.mrb[15].mxu0 }
 0xbab   : >> { %v1533_v37 = vadd.f32 %v1529_v35, %v3720_v40   ;;  %v3939_v0 = vmov %v1532_v5  ;;  %v1537_v38 = vsel (%p859_p9), %vm865_vm0, %v1532_v5, 0.0 }
 0xbac   : > { %1538 = vadd.xlane.f32.xlu0 (%p859_p9), %v1537_v38 }
 0xbad   : >> { %v3938_v1 = vmov %v1533_v37  ;;  %v1540_v41 = vsel (%p859_p9), %vm865_vm0, %v1533_v37, 0.0 }
 0xbb0   : > { %1541 = vadd.xlane.f32.xlu0 %v1540_v41 }
 0xbc6   : > { %1582 = vperm.xlu0 %2294, %v3558_v3  }
 0xc39   : > { %v1539_v40 = vpop.xlane.xlu0 %1538 }
 0xc3a   : > { %v1544_v42 = vmul.f32 0.03125, %v1539_v40 }
 0xc3c   : > { %v1546_v43 = vsub.f32 %v1532_v5, %v1544_v42 }
 0xc3d   : > { %v1542_v44 = vpop.xlane.xlu0 %1541 }
 0xc3e   : > { %v1545_v45 = vmul.f32 0.03125, %v1542_v44  ;;  %v1548_v0 = vmul.f32 %v1546_v43, %v1546_v43 }
 0xc40   : > { %v1547_v46 = vsub.f32 %v1533_v37, %v1545_v45  ;;  %v1550_v47 = vsel %vm865_vm0, %v1548_v0, 0.0 }
 0xc41   : > { %1551 = vadd.xlane.f32.xlu1 %v1550_v47 }
 0xc42   : > { %v1549_v6 = vmul.f32 %v1547_v46, %v1547_v46 }
 0xc44   : > { %v1553_v7 = vsel %vm865_vm0, %v1549_v6, 0.0 }
 0xc45   : > { %1554 = vadd.xlane.f32.xlu1 %v1553_v7 }
 0xc56   : > { %1587 = vperm.xlu1 %2295, %v3560_v4   ;;  %v1583_v4 = vpop.permute.xlu0 %1582 }
 0xcce   : > { %v1552_v8 = vpop.xlane.xlu1 %1551 }
 0xccf   : > { %v1556_v9 = vmul.f32 0.03125, %v1552_v8 }
 0xcd1   : > { %v1558_v10 = vadd.f32 1e-05, %v1556_v9 }
 0xcd2   : > { %v1555_v3 = vpop.xlane.xlu1 %1554 }
 0xcd3   : > { %2296 = vrsqrt.f32 %v1558_v10  ;;  %v1557_v11 = vmul.f32 0.03125, %v1555_v3 }
 0xcd5   : > { %v1559_v12 = vadd.f32 1e-05, %v1557_v11 }
 0xcd6   : > { %v1588_v23 = vpop.permute.xlu1 %1587 }
 0xcd7   : > { %2298 = vrsqrt.f32 %v1559_v12 }
 0xcdd   : > { %v2297_v13 = vpop.eup %2296 }
 0xcde   : > { %v1562_v15 = vmul.f32 %v2297_v13, %v1546_v43 }
 0xce0   : > { %v1570_v17 = vmul.f32 %v1934_v14, %v1562_v15 }
 0xce1   : > { %v2299_v18 = vpop.eup %2298 }
 0xce2   : > { %v1578_v19 = vadd.f32 %v1935_v16, %v1570_v17  ;;  %v1563_v20 = vmul.f32 %v2299_v18, %v1547_v46 }
 0xce4   : > { %v1590_v21 = vmul.f32 %v1583_v4, %v1578_v19  ;;  %v1571_v22 = vmul.f32 %v1934_v14, %v1563_v20 }
 0xce6   : > { %1592 = vst.msk [vmem:[%s3621_s28] sm:$0xff] %vm865_vm0, %v1590_v21  ;;  %v1579_v24 = vadd.f32 %v1935_v16, %v1571_v22 }
 0xce8   : > { %v1591_v25 = vmul.f32 %v1588_v23, %v1579_v24 }
 0xcea   : > { %1593 = vst.msk [vmem:[%s3621_s28 + $0x8] sm:$0xff] %vm865_vm0, %v1591_v25 }
 0xceb   : > { %2795 = shalt.err (!%p2792_p1)
}
 0xcec   : > { %s2796_s5 = scalar_lea.hbm %s3777_s10, 256  ;;  %s2800_s2 = scalar_lea.hbm %s3940_s11, 512 }
 0xced   : > { %p2797_p4 = scmp.ne.s32.totalorder %s3777_s10, %s2796_s5  ;;  %p2801_p6 = scmp.lt.u32.totalorder %s3777_s10, %s3940_s11 }
 0xcee   : > { %p2802_p2 = scmp.lt.u32.totalorder %s2800_s2, %s2796_s5  ;;  %p2804_p13 = scmp.lt.u32.totalorder %s2796_s5, %s3777_s10 }
 0xcef   : > { %p2798_p11 = pnand %p2797_p4, %p3941_p3 }
 0xcf0   : > { %p2803_p9 = por %p2802_p2, %p2801_p6 }
 0xcf1   : > { %p2799_p12 = pneg %p2798_p11 }
 0xcf2   : > { %p2805_p5 = por %p2804_p13, %p2803_p9 }
 0xcf4   : > { %p2806_p7 = pnand %p2805_p5, %p2799_p12 }
 0xcf6   : > { %2809 = shalt.err (!%p2806_p7)
}
 0xcf7   : > { %s2936_s26 = smov 128   ;;  %s2937_s4 = smov 8  }
 0xcf8   : > { %2093 = dma.vmem_to_hbm [thread:$0]  (%p3941_p3), %s3779_s14, 256, %s3777_s10, %s1595_s21, %s2936_s26, %s2936_s26, %s2937_s4  }
 0xcf9 PF: > { %s1623_s1 = sand.u32 1, %s2880_s24   ;;  %p3942_p8 = scmp.ne.s32.totalorder %s3902_s19, 0 }
 0xcfa   : > { %p3943_p0 = scmp.ge.s32.totalorder %s2892_s27, 2  ;;  %s1624_s29 = scalar_lea.sflag [#allocation4], %s1623_s1 }
 0xcfc   : > { %p2149_p10 = pnand %p3943_p0, %p3942_p8 }
 0xcfe   : > { %2875 = dma.done.wait (!%p2149_p10), %s1624_s29, 256  }
 0xcff   : > { %2877 = vsyncadd (!%p2149_p10), %s1624_s29, 4294967040  ;;  %s3944_s27 = sld [smem:[#allocation42_spill]]  ;;  %s3945_s16 = sld [smem:[#allocation40_spill]] }
 0xd00   : > { %s3946_s26 = sld [smem:[#allocation43_spill]]  ;;  %s3947_s24 = smov %s2884_s25 }
 0xd05   : > { %p40_p1 = scmp.ge.s32.totalorder %s3944_s27, 4   ;;  %s3948_s25 = smov %s3945_s16 }
 0xd07   :  { %42 = sbr.rel (!%p40_p1) target bundleno = 33 (0x21), region = 231 }
 0xd0e   :  { %1629 = vsyncpa [#allocation3], 1 }
 0xd0f   :  { %1631 = vsyncpa [#allocation3 + $0x1], 1 }
 0xd10   :  { %1632 = vsyncpa [#allocation6], 1 }
 0xd11   :  { %1634 = vsyncpa [#allocation6 + $0x1], 1 }
 0xd12   :  { %1635 = vsyncpa [#allocation9], 1 }
 0xd13   :  { %1636 = vsyncpa [#allocation12], 1 }
 0xd14   :  { %1637 = vsyncpa [#allocation15], 1 }
 0xd15   :  { %1638 = vsyncpa [#allocation18], 1 }
 0xd16   :  { %1639 = vsyncpa [#allocation21], 1 }
 0xd17   :  { %1640 = vsyncpa [#allocation24], 1 }
 0xd18   :  { %1641 = vsyncpa [#allocation27], 1 }
 0xd19   :  { %1642 = vsyncpa [#allocation4], 1 }
 0xd1a   :  { %1644 = vsyncpa [#allocation4 + $0x1], 1 }

</bundles_post_ra>
